<compile_context>
chip_gen: v5e
topology: v5e:2x2
jax: 0.10.0
libtpu: 0.0.40
codegen_flags: <defaults>
</compile_context>

<pallas_src>
import math
from functools import partial

import jax
import jax.numpy as jnp
from jax import lax
from jax.experimental import pallas as pl
from jax.experimental.pallas import tpu as pltpu


# ----------------------------- config (small) ------------------------------
CONFIG = dict(
    layer_size=2,
    d_model=32,
    hidden_size=64,
    head_num=4,
    src_length=8,
    dropout=0.1,   # unused (eval mode)
)
BATCH = 2
EPS = 1e-5


# ----------------------------- kernel helpers ------------------------------
def _layernorm(x, g, b):
    # x: (S, D), g/b: (1, D)
    mu = jnp.mean(x, axis=-1, keepdims=True)
    var = jnp.mean((x - mu) ** 2, axis=-1, keepdims=True)
    return (x - mu) * lax.rsqrt(var + EPS) * g + b


# --------------------------- fused encoder kernel --------------------------
def encoder_kernel(x_ref, pe_ref,
                   ln1g_ref, ln1b_ref,
                   wqkv_ref, bqkv_ref,
                   wo_ref, bo_ref,
                   ln2g_ref, ln2b_ref,
                   w1_ref, b1_ref, w2_ref, b2_ref,
                   fg_ref, fb_ref,
                   o_ref,
                   *, num_layers, num_heads):
    # CosinPosition: X + sinusoidal PE (dropout = identity in eval mode)
    x = x_ref[0] + pe_ref[...]                          # (S, D) f32
    S, D = x.shape
    H = w1_ref.shape[1]
    hd = D // num_heads
    scale = 1.0 / math.sqrt(hd)

    # ---- hoist ALL parameter loads / broadcasts / static slices out of the
    # ---- unrolled layer loop (loaded / built exactly once) ----
    ln1g, ln1b = ln1g_ref[...], ln1b_ref[...]
    wqkv = wqkv_ref[...]                                # (D, 3D)
    bqkv = jnp.broadcast_to(bqkv_ref[...], (S, 3 * D))  # hoisted sublane broadcast
    wo = wo_ref[...]                                    # (D, D)
    bo = jnp.broadcast_to(bo_ref[...], (S, D))
    ln2g, ln2b = ln2g_ref[...], ln2b_ref[...]
    w1 = w1_ref[...]                                    # (D, H)
    b1 = jnp.broadcast_to(b1_ref[...], (S, H))
    w2 = w2_ref[...]                                    # (H, D)
    b2 = jnp.broadcast_to(b2_ref[...], (S, D))
    fg, fb = fg_ref[...], fb_ref[...]

    # Static per-head row-slices of Wo (reused by every layer).
    wo_slices = [wo[h * hd:(h + 1) * hd, :] for h in range(num_heads)]

    # cloneLayers(deepcopy) -> every layer uses the same initial parameters.
    for _ in range(num_layers):                         # static unroll over layers
        # --- X = X + SelfAttention(LayerNorm1(X)) ---
        xn = _layernorm(x, ln1g, ln1b)
        qkv = jnp.dot(xn, wqkv, preferred_element_type=jnp.float32) + bqkv   # (S, 3D)

        # Per-head attention folded directly through Wo's matching row-slice:
        #   concat_h(head_h) @ Wo == sum_h head_h @ Wo[h*hd:(h+1)*hd, :]
        attn_out = bo                                   # start with output bias
        for h in range(num_heads):                      # static unroll over heads
            q_h = qkv[:,         h * hd:        (h + 1) * hd]   # (S, hd)
            k_h = qkv[:,     D + h * hd:    D + (h + 1) * hd]
            v_h = qkv[:, 2 * D + h * hd: 2 * D + (h + 1) * hd]
            # contract last dims directly: no explicit transpose needed.
            s = lax.dot_general(q_h, k_h, (((1,), (1,)), ((), ())),
                                preferred_element_type=jnp.float32) * scale   # (S, S)
            s = s - jnp.max(s, axis=-1, keepdims=True)
            p = jnp.exp(s)
            p = p * pl.reciprocal(jnp.sum(p, axis=-1, keepdims=True), approx=True)
            oh = jnp.dot(p, v_h, preferred_element_type=jnp.float32)          # (S, hd)
            attn_out = attn_out + jnp.dot(oh, wo_slices[h],
                                          preferred_element_type=jnp.float32)
        x = x + attn_out

        # --- X = X + MLP(LayerNorm2(X)) ---
        xn2 = _layernorm(x, ln2g, ln2b)
        h1 = jnp.maximum(jnp.dot(xn2, w1, preferred_element_type=jnp.float32) + b1, 0.0)
        x = x + jnp.dot(h1, w2, preferred_element_type=jnp.float32) + b2

    # final LayerNorm of the Encoder
    o_ref[0] = _layernorm(x, fg, fb)


def encoder_forward(x, pe, params, final_g, final_b, num_layers, num_heads):
    """Single fused pallas_call for the whole encoder stack."""
    B, S, D = x.shape

    # One-time weight prep: fuse Q/K/V projections into a single matmul.
    wqkv = jnp.concatenate([params["wq"], params["wk"], params["wv"]], axis=1)  # (D, 3D)
    bqkv = jnp.concatenate([params["bq"], params["bk"], params["bv"]], axis=1)  # (1, 3D)

    weight_args = [
        pe,
        params["ln1_g"], params["ln1_b"],
        wqkv, bqkv,
        params["wo"], params["bo"],
        params["ln2_g"], params["ln2_b"],
        params["w1"], params["b1"], params["w2"], params["b2"],
        final_g, final_b,
    ]

    def full_spec(a):
        n = a.ndim
        return pl.BlockSpec(a.shape, lambda b, _n=n: (0,) * _n)

    weight_specs = [full_spec(a) for a in weight_args]

    return pl.pallas_call(
        partial(encoder_kernel, num_layers=num_layers, num_heads=num_heads),
        out_shape=jax.ShapeDtypeStruct((B, S, D), jnp.float32),
        grid_spec=pltpu.PrefetchScalarGridSpec(
            num_scalar_prefetch=0,
            grid=(B,),   # one batch element per program -> v7x's 2 TCs split it
            in_specs=[pl.BlockSpec((1, S, D), lambda b: (b, 0, 0))] + weight_specs,
            out_specs=pl.BlockSpec((1, S, D), lambda b: (b, 0, 0)),
        ),
        compiler_params=pltpu.CompilerParams(dimension_semantics=("parallel",)),
    )(x, *weight_args)


# --------------------------- parameter construction ------------------------
def init_params(key, d_model, hidden_size):
    ks = jax.random.split(key, 8)
    scale = 0.05

    def lin(k, fan_in, fan_out):
        return scale * jax.random.normal(k, (fan_in, fan_out), jnp.float32)

    return dict(
        ln1_g=jnp.ones((1, d_model), jnp.float32),
        ln1_b=jnp.zeros((1, d_model), jnp.float32),
        wq=lin(ks[0], d_model, d_model), bq=jnp.zeros((1, d_model), jnp.float32),
        wk=lin(ks[1], d_model, d_model), bk=jnp.zeros((1, d_model), jnp.float32),
        wv=lin(ks[2], d_model, d_model), bv=jnp.zeros((1, d_model), jnp.float32),
        wo=lin(ks[3], d_model, d_model), bo=jnp.zeros((1, d_model), jnp.float32),
        ln2_g=jnp.ones((1, d_model), jnp.float32),
        ln2_b=jnp.zeros((1, d_model), jnp.float32),
        w1=lin(ks[4], d_model, hidden_size), b1=jnp.zeros((1, hidden_size), jnp.float32),
        w2=lin(ks[5], hidden_size, d_model), b2=jnp.zeros((1, d_model), jnp.float32),
    )


def sinusoidal_pe(seq_len, d_model):
    pos = jnp.arange(seq_len, dtype=jnp.float32)[:, None]
    i = jnp.arange(0, d_model, 2, dtype=jnp.float32)[None, :]
    div = jnp.exp(-jnp.log(10000.0) * i / d_model)
    pe = jnp.zeros((seq_len, d_model), jnp.float32)
    pe = pe.at[:, 0::2].set(jnp.sin(pos * div))
    pe = pe.at[:, 1::2].set(jnp.cos(pos * div))
    return pe


# --------------------------- pure-JAX reference ----------------------------
def _ref_ln(x, g, b):
    mu = jnp.mean(x, axis=-1, keepdims=True)
    var = jnp.mean((x - mu) ** 2, axis=-1, keepdims=True)
    return (x - mu) * lax.rsqrt(var + EPS) * g + b


def ref_forward(x, p, final_g, final_b, num_layers, num_heads):
    B, S, D = x.shape
    hd = D // num_heads
    x = x + sinusoidal_pe(S, D)[None]
    for _ in range(num_layers):
        xn = _ref_ln(x, p["ln1_g"], p["ln1_b"])
        q = xn @ p["wq"] + p["bq"]
        k = xn @ p["wk"] + p["bk"]
        v = xn @ p["wv"] + p["bv"]
        q = q.reshape(B, S, num_heads, hd).transpose(0, 2, 1, 3)
        k = k.reshape(B, S, num_heads, hd).transpose(0, 2, 1, 3)
        v = v.reshape(B, S, num_heads, hd).transpose(0, 2, 1, 3)
        s = jnp.einsum("bhqd,bhkd->bhqk", q, k) / math.sqrt(hd)
        pmat = jax.nn.softmax(s, axis=-1)
        a = jnp.einsum("bhqk,bhkd->bhqd", pmat, v).transpose(0, 2, 1, 3).reshape(B, S, D)
        x = x + (a @ p["wo"] + p["bo"])
        xn2 = _ref_ln(x, p["ln2_g"], p["ln2_b"])
        h1 = jnp.maximum(xn2 @ p["w1"] + p["b1"], 0.0)
        x = x + (h1 @ p["w2"] + p["b2"])
    return _ref_ln(x, final_g, final_b)


# --------------------------------- driver ----------------------------------
if __name__ == "__main__":
    cfg = CONFIG
    key = jax.random.PRNGKey(0)
    k_x, k_p = jax.random.split(key)

    x = jax.random.normal(
        k_x, (BATCH, cfg["src_length"], cfg["d_model"]), jnp.float32)

    block_params = init_params(k_p, cfg["d_model"], cfg["hidden_size"])
    final_g = jnp.ones((1, cfg["d_model"]), jnp.float32)
    final_b = jnp.zeros((1, cfg["d_model"]), jnp.float32)
    pe = sinusoidal_pe(cfg["src_length"], cfg["d_model"])

    out = encoder_forward(x, pe, block_params, final_g, final_b,
                          cfg["layer_size"], cfg["head_num"])
    out = jax.block_until_ready(out)

    ref = ref_forward(x, block_params, final_g, final_b,
                      cfg["layer_size"], cfg["head_num"])
    assert out.shape == (BATCH, cfg["src_length"], cfg["d_model"])
    # approx=True softmax reciprocal introduces a tiny approximation; still tight.
    assert jnp.allclose(out, ref, atol=2e-3, rtol=2e-3), "mismatch vs reference"

    print("KERNEL_OK")
</pallas_src>

<mosaic_0001>
module attributes {stable_mosaic.version = 11 : i64} {
  func.func @encoder_kernel(%arg0: i32, %arg1: memref<1x8x32xf32, #tpu.memory_space<vmem>>, %arg2: memref<8x32xf32, #tpu.memory_space<vmem>>, %arg3: memref<1x32xf32, #tpu.memory_space<vmem>>, %arg4: memref<1x32xf32, #tpu.memory_space<vmem>>, %arg5: memref<32x96xf32, #tpu.memory_space<vmem>>, %arg6: memref<1x96xf32, #tpu.memory_space<vmem>>, %arg7: memref<32x32xf32, #tpu.memory_space<vmem>>, %arg8: memref<1x32xf32, #tpu.memory_space<vmem>>, %arg9: memref<1x32xf32, #tpu.memory_space<vmem>>, %arg10: memref<1x32xf32, #tpu.memory_space<vmem>>, %arg11: memref<32x64xf32, #tpu.memory_space<vmem>>, %arg12: memref<1x64xf32, #tpu.memory_space<vmem>>, %arg13: memref<64x32xf32, #tpu.memory_space<vmem>>, %arg14: memref<1x32xf32, #tpu.memory_space<vmem>>, %arg15: memref<1x32xf32, #tpu.memory_space<vmem>>, %arg16: memref<1x32xf32, #tpu.memory_space<vmem>>, %arg17: memref<1x8x32xf32, #tpu.memory_space<vmem>>) attributes {dimension_semantics = [#tpu.dimension_semantics<parallel>], iteration_bounds = array<i64: 2>, scalar_prefetch = 0 : i64, scratch_operands = 0 : i64, tpu.core_type = #tpu.core_type<tc>, window_params = [{transform_indices = @transform_0, window_bounds = array<i64: 1, 8, 32>}, {pipeline_mode = #tpu.pipeline_mode<synchronous>, transform_indices = @transform_1, window_bounds = array<i64: 8, 32>}, {pipeline_mode = #tpu.pipeline_mode<synchronous>, transform_indices = @transform_2, window_bounds = array<i64: 1, 32>}, {pipeline_mode = #tpu.pipeline_mode<synchronous>, transform_indices = @transform_3, window_bounds = array<i64: 1, 32>}, {pipeline_mode = #tpu.pipeline_mode<synchronous>, transform_indices = @transform_4, window_bounds = array<i64: 32, 96>}, {pipeline_mode = #tpu.pipeline_mode<synchronous>, transform_indices = @transform_5, window_bounds = array<i64: 1, 96>}, {pipeline_mode = #tpu.pipeline_mode<synchronous>, transform_indices = @transform_6, window_bounds = array<i64: 32, 32>}, {pipeline_mode = #tpu.pipeline_mode<synchronous>, transform_indices = @transform_7, window_bounds = array<i64: 1, 32>}, {pipeline_mode = #tpu.pipeline_mode<synchronous>, transform_indices = @transform_8, window_bounds = array<i64: 1, 32>}, {pipeline_mode = #tpu.pipeline_mode<synchronous>, transform_indices = @transform_9, window_bounds = array<i64: 1, 32>}, {pipeline_mode = #tpu.pipeline_mode<synchronous>, transform_indices = @transform_10, window_bounds = array<i64: 32, 64>}, {pipeline_mode = #tpu.pipeline_mode<synchronous>, transform_indices = @transform_11, window_bounds = array<i64: 1, 64>}, {pipeline_mode = #tpu.pipeline_mode<synchronous>, transform_indices = @transform_12, window_bounds = array<i64: 64, 32>}, {pipeline_mode = #tpu.pipeline_mode<synchronous>, transform_indices = @transform_13, window_bounds = array<i64: 1, 32>}, {pipeline_mode = #tpu.pipeline_mode<synchronous>, transform_indices = @transform_14, window_bounds = array<i64: 1, 32>}, {pipeline_mode = #tpu.pipeline_mode<synchronous>, transform_indices = @transform_15, window_bounds = array<i64: 1, 32>}, {transform_indices = @transform_16, window_bounds = array<i64: 1, 8, 32>}]} {
    %c0 = arith.constant 0 : index
    %c0_0 = arith.constant 0 : index
    %c0_1 = arith.constant 0 : index
    %0 = vector.load %arg1[%c0, %c0_0, %c0_1] : memref<1x8x32xf32, #tpu.memory_space<vmem>>, vector<1x8x32xf32>
    %1 = vector.shape_cast %0 : vector<1x8x32xf32> to vector<8x32xf32>
    %c0_2 = arith.constant 0 : index
    %c0_3 = arith.constant 0 : index
    %2 = vector.load %arg2[%c0_2, %c0_3] : memref<8x32xf32, #tpu.memory_space<vmem>>, vector<8x32xf32>
    %3 = arith.addf %1, %2 : vector<8x32xf32>
    %c0_4 = arith.constant 0 : index
    %c0_5 = arith.constant 0 : index
    %4 = vector.load %arg3[%c0_4, %c0_5] : memref<1x32xf32, #tpu.memory_space<vmem>>, vector<1x32xf32>
    %c0_6 = arith.constant 0 : index
    %c0_7 = arith.constant 0 : index
    %5 = vector.load %arg4[%c0_6, %c0_7] : memref<1x32xf32, #tpu.memory_space<vmem>>, vector<1x32xf32>
    %c0_8 = arith.constant 0 : index
    %c0_9 = arith.constant 0 : index
    %6 = vector.load %arg5[%c0_8, %c0_9] : memref<32x96xf32, #tpu.memory_space<vmem>>, vector<32x96xf32>
    %c0_10 = arith.constant 0 : index
    %c0_11 = arith.constant 0 : index
    %7 = vector.load %arg6[%c0_10, %c0_11] : memref<1x96xf32, #tpu.memory_space<vmem>>, vector<1x96xf32>
    %8 = vector.shape_cast %7 : vector<1x96xf32> to vector<1x96xf32>
    %9 = vector.broadcast %8 : vector<1x96xf32> to vector<8x96xf32>
    %c0_12 = arith.constant 0 : index
    %c0_13 = arith.constant 0 : index
    %10 = vector.load %arg7[%c0_12, %c0_13] : memref<32x32xf32, #tpu.memory_space<vmem>>, vector<32x32xf32>
    %c0_14 = arith.constant 0 : index
    %c0_15 = arith.constant 0 : index
    %11 = vector.load %arg8[%c0_14, %c0_15] : memref<1x32xf32, #tpu.memory_space<vmem>>, vector<1x32xf32>
    %12 = vector.shape_cast %11 : vector<1x32xf32> to vector<1x32xf32>
    %13 = vector.broadcast %12 : vector<1x32xf32> to vector<8x32xf32>
    %c0_16 = arith.constant 0 : index
    %c0_17 = arith.constant 0 : index
    %14 = vector.load %arg9[%c0_16, %c0_17] : memref<1x32xf32, #tpu.memory_space<vmem>>, vector<1x32xf32>
    %c0_18 = arith.constant 0 : index
    %c0_19 = arith.constant 0 : index
    %15 = vector.load %arg10[%c0_18, %c0_19] : memref<1x32xf32, #tpu.memory_space<vmem>>, vector<1x32xf32>
    %c0_20 = arith.constant 0 : index
    %c0_21 = arith.constant 0 : index
    %16 = vector.load %arg11[%c0_20, %c0_21] : memref<32x64xf32, #tpu.memory_space<vmem>>, vector<32x64xf32>
    %c0_22 = arith.constant 0 : index
    %c0_23 = arith.constant 0 : index
    %17 = vector.load %arg12[%c0_22, %c0_23] : memref<1x64xf32, #tpu.memory_space<vmem>>, vector<1x64xf32>
    %18 = vector.shape_cast %17 : vector<1x64xf32> to vector<1x64xf32>
    %19 = vector.broadcast %18 : vector<1x64xf32> to vector<8x64xf32>
    %c0_24 = arith.constant 0 : index
    %c0_25 = arith.constant 0 : index
    %20 = vector.load %arg13[%c0_24, %c0_25] : memref<64x32xf32, #tpu.memory_space<vmem>>, vector<64x32xf32>
    %c0_26 = arith.constant 0 : index
    %c0_27 = arith.constant 0 : index
    %21 = vector.load %arg14[%c0_26, %c0_27] : memref<1x32xf32, #tpu.memory_space<vmem>>, vector<1x32xf32>
    %22 = vector.shape_cast %21 : vector<1x32xf32> to vector<1x32xf32>
    %23 = vector.broadcast %22 : vector<1x32xf32> to vector<8x32xf32>
    %c0_28 = arith.constant 0 : index
    %c0_29 = arith.constant 0 : index
    %24 = vector.load %arg15[%c0_28, %c0_29] : memref<1x32xf32, #tpu.memory_space<vmem>>, vector<1x32xf32>
    %c0_30 = arith.constant 0 : index
    %c0_31 = arith.constant 0 : index
    %25 = vector.load %arg16[%c0_30, %c0_31] : memref<1x32xf32, #tpu.memory_space<vmem>>, vector<1x32xf32>
    %26 = vector.extract_strided_slice %10 {offsets = [0, 0], sizes = [8, 32], strides = [1, 1]} : vector<32x32xf32> to vector<8x32xf32>
    %27 = vector.extract_strided_slice %10 {offsets = [8, 0], sizes = [8, 32], strides = [1, 1]} : vector<32x32xf32> to vector<8x32xf32>
    %28 = vector.extract_strided_slice %10 {offsets = [16, 0], sizes = [8, 32], strides = [1, 1]} : vector<32x32xf32> to vector<8x32xf32>
    %29 = vector.extract_strided_slice %10 {offsets = [24, 0], sizes = [8, 32], strides = [1, 1]} : vector<32x32xf32> to vector<8x32xf32>
    %cst = arith.constant dense<0.000000e+00> : vector<8xf32>
    %30 = vector.multi_reduction <add>, %3, %cst [1] : vector<8x32xf32> to vector<8xf32>
    %31 = vector.shape_cast %30 : vector<8xf32> to vector<8x1xf32>
    %cst_32 = arith.constant 3.200000e+01 : f32
    %32 = vector.broadcast %cst_32 : f32 to vector<8x1xf32>
    %33 = arith.divf %31, %32 : vector<8x1xf32>
    %34 = vector.broadcast %33 : vector<8x1xf32> to vector<8x32xf32>
    %35 = arith.subf %3, %34 : vector<8x32xf32>
    %36 = arith.mulf %35, %35 : vector<8x32xf32>
    %cst_33 = arith.constant dense<0.000000e+00> : vector<8xf32>
    %37 = vector.multi_reduction <add>, %36, %cst_33 [1] : vector<8x32xf32> to vector<8xf32>
    %38 = vector.shape_cast %37 : vector<8xf32> to vector<8x1xf32>
    %cst_34 = arith.constant 3.200000e+01 : f32
    %39 = vector.broadcast %cst_34 : f32 to vector<8x1xf32>
    %40 = arith.divf %38, %39 : vector<8x1xf32>
    %41 = vector.broadcast %33 : vector<8x1xf32> to vector<8x32xf32>
    %42 = arith.subf %3, %41 : vector<8x32xf32>
    %cst_35 = arith.constant 9.99999974E-6 : f32
    %43 = vector.broadcast %cst_35 : f32 to vector<8x1xf32>
    %44 = arith.addf %40, %43 : vector<8x1xf32>
    %45 = math.rsqrt %44 : vector<8x1xf32>
    %46 = vector.broadcast %45 : vector<8x1xf32> to vector<8x32xf32>
    %47 = arith.mulf %42, %46 : vector<8x32xf32>
    %48 = vector.broadcast %4 : vector<1x32xf32> to vector<8x32xf32>
    %49 = arith.mulf %47, %48 : vector<8x32xf32>
    %50 = vector.broadcast %5 : vector<1x32xf32> to vector<8x32xf32>
    %51 = arith.addf %49, %50 : vector<8x32xf32>
    %cst_36 = arith.constant dense<0.000000e+00> : vector<8x96xf32>
    %52 = tpu.matmul %51, %6, %cst_36 {dimension_numbers = #tpu.dot_dimension_numbers<[1], [0], [0], [1], [0, 0, 1, 1], [], []>} : vector<8x32xf32>, vector<32x96xf32>, vector<8x96xf32> -> vector<8x96xf32>
    %53 = arith.addf %52, %9 : vector<8x96xf32>
    %54 = vector.extract_strided_slice %53 {offsets = [0, 0], sizes = [8, 8], strides = [1, 1]} : vector<8x96xf32> to vector<8x8xf32>
    %55 = vector.extract_strided_slice %53 {offsets = [0, 32], sizes = [8, 8], strides = [1, 1]} : vector<8x96xf32> to vector<8x8xf32>
    %56 = vector.extract_strided_slice %53 {offsets = [0, 64], sizes = [8, 8], strides = [1, 1]} : vector<8x96xf32> to vector<8x8xf32>
    %cst_37 = arith.constant dense<0.000000e+00> : vector<8x8xf32>
    %57 = tpu.matmul %54, %55, %cst_37 {dimension_numbers = #tpu.dot_dimension_numbers<[1], [1], [0], [0], [0, 0, 1, 0], [], []>} : vector<8x8xf32>, vector<8x8xf32>, vector<8x8xf32> -> vector<8x8xf32>
    %cst_38 = arith.constant 0.353553385 : f32
    %58 = vector.broadcast %cst_38 : f32 to vector<8x8xf32>
    %59 = arith.mulf %57, %58 : vector<8x8xf32>
    %cst_39 = arith.constant dense<0xFF800000> : vector<8xf32>
    %60 = vector.multi_reduction <maximumf>, %59, %cst_39 [1] : vector<8x8xf32> to vector<8xf32>
    %61 = vector.shape_cast %60 : vector<8xf32> to vector<8x1xf32>
    %62 = vector.broadcast %61 : vector<8x1xf32> to vector<8x8xf32>
    %63 = arith.subf %59, %62 : vector<8x8xf32>
    %64 = math.exp %63 : vector<8x8xf32>
    %cst_40 = arith.constant dense<0.000000e+00> : vector<8xf32>
    %65 = vector.multi_reduction <add>, %64, %cst_40 [1] : vector<8x8xf32> to vector<8xf32>
    %66 = vector.shape_cast %65 : vector<8xf32> to vector<8x1xf32>
    %67 = tpu.reciprocal %66 {approx = true} : vector<8x1xf32> -> vector<8x1xf32>
    %68 = vector.broadcast %67 : vector<8x1xf32> to vector<8x8xf32>
    %69 = arith.mulf %64, %68 : vector<8x8xf32>
    %cst_41 = arith.constant dense<0.000000e+00> : vector<8x8xf32>
    %70 = tpu.matmul %69, %56, %cst_41 {dimension_numbers = #tpu.dot_dimension_numbers<[1], [0], [0], [1], [0, 0, 1, 1], [], []>} : vector<8x8xf32>, vector<8x8xf32>, vector<8x8xf32> -> vector<8x8xf32>
    %cst_42 = arith.constant dense<0.000000e+00> : vector<8x32xf32>
    %71 = tpu.matmul %70, %26, %cst_42 {dimension_numbers = #tpu.dot_dimension_numbers<[1], [0], [0], [1], [0, 0, 1, 1], [], []>} : vector<8x8xf32>, vector<8x32xf32>, vector<8x32xf32> -> vector<8x32xf32>
    %72 = arith.addf %13, %71 : vector<8x32xf32>
    %73 = vector.extract_strided_slice %53 {offsets = [0, 8], sizes = [8, 8], strides = [1, 1]} : vector<8x96xf32> to vector<8x8xf32>
    %74 = vector.extract_strided_slice %53 {offsets = [0, 40], sizes = [8, 8], strides = [1, 1]} : vector<8x96xf32> to vector<8x8xf32>
    %75 = vector.extract_strided_slice %53 {offsets = [0, 72], sizes = [8, 8], strides = [1, 1]} : vector<8x96xf32> to vector<8x8xf32>
    %cst_43 = arith.constant dense<0.000000e+00> : vector<8x8xf32>
    %76 = tpu.matmul %73, %74, %cst_43 {dimension_numbers = #tpu.dot_dimension_numbers<[1], [1], [0], [0], [0, 0, 1, 0], [], []>} : vector<8x8xf32>, vector<8x8xf32>, vector<8x8xf32> -> vector<8x8xf32>
    %cst_44 = arith.constant 0.353553385 : f32
    %77 = vector.broadcast %cst_44 : f32 to vector<8x8xf32>
    %78 = arith.mulf %76, %77 : vector<8x8xf32>
    %cst_45 = arith.constant dense<0xFF800000> : vector<8xf32>
    %79 = vector.multi_reduction <maximumf>, %78, %cst_45 [1] : vector<8x8xf32> to vector<8xf32>
    %80 = vector.shape_cast %79 : vector<8xf32> to vector<8x1xf32>
    %81 = vector.broadcast %80 : vector<8x1xf32> to vector<8x8xf32>
    %82 = arith.subf %78, %81 : vector<8x8xf32>
    %83 = math.exp %82 : vector<8x8xf32>
    %cst_46 = arith.constant dense<0.000000e+00> : vector<8xf32>
    %84 = vector.multi_reduction <add>, %83, %cst_46 [1] : vector<8x8xf32> to vector<8xf32>
    %85 = vector.shape_cast %84 : vector<8xf32> to vector<8x1xf32>
    %86 = tpu.reciprocal %85 {approx = true} : vector<8x1xf32> -> vector<8x1xf32>
    %87 = vector.broadcast %86 : vector<8x1xf32> to vector<8x8xf32>
    %88 = arith.mulf %83, %87 : vector<8x8xf32>
    %cst_47 = arith.constant dense<0.000000e+00> : vector<8x8xf32>
    %89 = tpu.matmul %88, %75, %cst_47 {dimension_numbers = #tpu.dot_dimension_numbers<[1], [0], [0], [1], [0, 0, 1, 1], [], []>} : vector<8x8xf32>, vector<8x8xf32>, vector<8x8xf32> -> vector<8x8xf32>
    %cst_48 = arith.constant dense<0.000000e+00> : vector<8x32xf32>
    %90 = tpu.matmul %89, %27, %cst_48 {dimension_numbers = #tpu.dot_dimension_numbers<[1], [0], [0], [1], [0, 0, 1, 1], [], []>} : vector<8x8xf32>, vector<8x32xf32>, vector<8x32xf32> -> vector<8x32xf32>
    %91 = arith.addf %72, %90 : vector<8x32xf32>
    %92 = vector.extract_strided_slice %53 {offsets = [0, 16], sizes = [8, 8], strides = [1, 1]} : vector<8x96xf32> to vector<8x8xf32>
    %93 = vector.extract_strided_slice %53 {offsets = [0, 48], sizes = [8, 8], strides = [1, 1]} : vector<8x96xf32> to vector<8x8xf32>
    %94 = vector.extract_strided_slice %53 {offsets = [0, 80], sizes = [8, 8], strides = [1, 1]} : vector<8x96xf32> to vector<8x8xf32>
    %cst_49 = arith.constant dense<0.000000e+00> : vector<8x8xf32>
    %95 = tpu.matmul %92, %93, %cst_49 {dimension_numbers = #tpu.dot_dimension_numbers<[1], [1], [0], [0], [0, 0, 1, 0], [], []>} : vector<8x8xf32>, vector<8x8xf32>, vector<8x8xf32> -> vector<8x8xf32>
    %cst_50 = arith.constant 0.353553385 : f32
    %96 = vector.broadcast %cst_50 : f32 to vector<8x8xf32>
    %97 = arith.mulf %95, %96 : vector<8x8xf32>
    %cst_51 = arith.constant dense<0xFF800000> : vector<8xf32>
    %98 = vector.multi_reduction <maximumf>, %97, %cst_51 [1] : vector<8x8xf32> to vector<8xf32>
    %99 = vector.shape_cast %98 : vector<8xf32> to vector<8x1xf32>
    %100 = vector.broadcast %99 : vector<8x1xf32> to vector<8x8xf32>
    %101 = arith.subf %97, %100 : vector<8x8xf32>
    %102 = math.exp %101 : vector<8x8xf32>
    %cst_52 = arith.constant dense<0.000000e+00> : vector<8xf32>
    %103 = vector.multi_reduction <add>, %102, %cst_52 [1] : vector<8x8xf32> to vector<8xf32>
    %104 = vector.shape_cast %103 : vector<8xf32> to vector<8x1xf32>
    %105 = tpu.reciprocal %104 {approx = true} : vector<8x1xf32> -> vector<8x1xf32>
    %106 = vector.broadcast %105 : vector<8x1xf32> to vector<8x8xf32>
    %107 = arith.mulf %102, %106 : vector<8x8xf32>
    %cst_53 = arith.constant dense<0.000000e+00> : vector<8x8xf32>
    %108 = tpu.matmul %107, %94, %cst_53 {dimension_numbers = #tpu.dot_dimension_numbers<[1], [0], [0], [1], [0, 0, 1, 1], [], []>} : vector<8x8xf32>, vector<8x8xf32>, vector<8x8xf32> -> vector<8x8xf32>
    %cst_54 = arith.constant dense<0.000000e+00> : vector<8x32xf32>
    %109 = tpu.matmul %108, %28, %cst_54 {dimension_numbers = #tpu.dot_dimension_numbers<[1], [0], [0], [1], [0, 0, 1, 1], [], []>} : vector<8x8xf32>, vector<8x32xf32>, vector<8x32xf32> -> vector<8x32xf32>
    %110 = arith.addf %91, %109 : vector<8x32xf32>
    %111 = vector.extract_strided_slice %53 {offsets = [0, 24], sizes = [8, 8], strides = [1, 1]} : vector<8x96xf32> to vector<8x8xf32>
    %112 = vector.extract_strided_slice %53 {offsets = [0, 56], sizes = [8, 8], strides = [1, 1]} : vector<8x96xf32> to vector<8x8xf32>
    %113 = vector.extract_strided_slice %53 {offsets = [0, 88], sizes = [8, 8], strides = [1, 1]} : vector<8x96xf32> to vector<8x8xf32>
    %cst_55 = arith.constant dense<0.000000e+00> : vector<8x8xf32>
    %114 = tpu.matmul %111, %112, %cst_55 {dimension_numbers = #tpu.dot_dimension_numbers<[1], [1], [0], [0], [0, 0, 1, 0], [], []>} : vector<8x8xf32>, vector<8x8xf32>, vector<8x8xf32> -> vector<8x8xf32>
    %cst_56 = arith.constant 0.353553385 : f32
    %115 = vector.broadcast %cst_56 : f32 to vector<8x8xf32>
    %116 = arith.mulf %114, %115 : vector<8x8xf32>
    %cst_57 = arith.constant dense<0xFF800000> : vector<8xf32>
    %117 = vector.multi_reduction <maximumf>, %116, %cst_57 [1] : vector<8x8xf32> to vector<8xf32>
    %118 = vector.shape_cast %117 : vector<8xf32> to vector<8x1xf32>
    %119 = vector.broadcast %118 : vector<8x1xf32> to vector<8x8xf32>
    %120 = arith.subf %116, %119 : vector<8x8xf32>
    %121 = math.exp %120 : vector<8x8xf32>
    %cst_58 = arith.constant dense<0.000000e+00> : vector<8xf32>
    %122 = vector.multi_reduction <add>, %121, %cst_58 [1] : vector<8x8xf32> to vector<8xf32>
    %123 = vector.shape_cast %122 : vector<8xf32> to vector<8x1xf32>
    %124 = tpu.reciprocal %123 {approx = true} : vector<8x1xf32> -> vector<8x1xf32>
    %125 = vector.broadcast %124 : vector<8x1xf32> to vector<8x8xf32>
    %126 = arith.mulf %121, %125 : vector<8x8xf32>
    %cst_59 = arith.constant dense<0.000000e+00> : vector<8x8xf32>
    %127 = tpu.matmul %126, %113, %cst_59 {dimension_numbers = #tpu.dot_dimension_numbers<[1], [0], [0], [1], [0, 0, 1, 1], [], []>} : vector<8x8xf32>, vector<8x8xf32>, vector<8x8xf32> -> vector<8x8xf32>
    %cst_60 = arith.constant dense<0.000000e+00> : vector<8x32xf32>
    %128 = tpu.matmul %127, %29, %cst_60 {dimension_numbers = #tpu.dot_dimension_numbers<[1], [0], [0], [1], [0, 0, 1, 1], [], []>} : vector<8x8xf32>, vector<8x32xf32>, vector<8x32xf32> -> vector<8x32xf32>
    %129 = arith.addf %110, %128 : vector<8x32xf32>
    %130 = arith.addf %3, %129 : vector<8x32xf32>
    %cst_61 = arith.constant dense<0.000000e+00> : vector<8xf32>
    %131 = vector.multi_reduction <add>, %130, %cst_61 [1] : vector<8x32xf32> to vector<8xf32>
    %132 = vector.shape_cast %131 : vector<8xf32> to vector<8x1xf32>
    %cst_62 = arith.constant 3.200000e+01 : f32
    %133 = vector.broadcast %cst_62 : f32 to vector<8x1xf32>
    %134 = arith.divf %132, %133 : vector<8x1xf32>
    %135 = vector.broadcast %134 : vector<8x1xf32> to vector<8x32xf32>
    %136 = arith.subf %130, %135 : vector<8x32xf32>
    %137 = arith.mulf %136, %136 : vector<8x32xf32>
    %cst_63 = arith.constant dense<0.000000e+00> : vector<8xf32>
    %138 = vector.multi_reduction <add>, %137, %cst_63 [1] : vector<8x32xf32> to vector<8xf32>
    %139 = vector.shape_cast %138 : vector<8xf32> to vector<8x1xf32>
    %cst_64 = arith.constant 3.200000e+01 : f32
    %140 = vector.broadcast %cst_64 : f32 to vector<8x1xf32>
    %141 = arith.divf %139, %140 : vector<8x1xf32>
    %142 = vector.broadcast %134 : vector<8x1xf32> to vector<8x32xf32>
    %143 = arith.subf %130, %142 : vector<8x32xf32>
    %cst_65 = arith.constant 9.99999974E-6 : f32
    %144 = vector.broadcast %cst_65 : f32 to vector<8x1xf32>
    %145 = arith.addf %141, %144 : vector<8x1xf32>
    %146 = math.rsqrt %145 : vector<8x1xf32>
    %147 = vector.broadcast %146 : vector<8x1xf32> to vector<8x32xf32>
    %148 = arith.mulf %143, %147 : vector<8x32xf32>
    %149 = vector.broadcast %14 : vector<1x32xf32> to vector<8x32xf32>
    %150 = arith.mulf %148, %149 : vector<8x32xf32>
    %151 = vector.broadcast %15 : vector<1x32xf32> to vector<8x32xf32>
    %152 = arith.addf %150, %151 : vector<8x32xf32>
    %cst_66 = arith.constant dense<0.000000e+00> : vector<8x64xf32>
    %153 = tpu.matmul %152, %16, %cst_66 {dimension_numbers = #tpu.dot_dimension_numbers<[1], [0], [0], [1], [0, 0, 1, 1], [], []>} : vector<8x32xf32>, vector<32x64xf32>, vector<8x64xf32> -> vector<8x64xf32>
    %154 = arith.addf %153, %19 : vector<8x64xf32>
    %cst_67 = arith.constant 0.000000e+00 : f32
    %155 = vector.broadcast %cst_67 : f32 to vector<8x64xf32>
    %156 = arith.maximumf %154, %155 : vector<8x64xf32>
    %cst_68 = arith.constant dense<0.000000e+00> : vector<8x32xf32>
    %157 = tpu.matmul %156, %20, %cst_68 {dimension_numbers = #tpu.dot_dimension_numbers<[1], [0], [0], [1], [0, 0, 1, 1], [], []>} : vector<8x64xf32>, vector<64x32xf32>, vector<8x32xf32> -> vector<8x32xf32>
    %158 = arith.addf %130, %157 : vector<8x32xf32>
    %159 = arith.addf %158, %23 : vector<8x32xf32>
    %cst_69 = arith.constant dense<0.000000e+00> : vector<8xf32>
    %160 = vector.multi_reduction <add>, %159, %cst_69 [1] : vector<8x32xf32> to vector<8xf32>
    %161 = vector.shape_cast %160 : vector<8xf32> to vector<8x1xf32>
    %cst_70 = arith.constant 3.200000e+01 : f32
    %162 = vector.broadcast %cst_70 : f32 to vector<8x1xf32>
    %163 = arith.divf %161, %162 : vector<8x1xf32>
    %164 = vector.broadcast %163 : vector<8x1xf32> to vector<8x32xf32>
    %165 = arith.subf %159, %164 : vector<8x32xf32>
    %166 = arith.mulf %165, %165 : vector<8x32xf32>
    %cst_71 = arith.constant dense<0.000000e+00> : vector<8xf32>
    %167 = vector.multi_reduction <add>, %166, %cst_71 [1] : vector<8x32xf32> to vector<8xf32>
    %168 = vector.shape_cast %167 : vector<8xf32> to vector<8x1xf32>
    %cst_72 = arith.constant 3.200000e+01 : f32
    %169 = vector.broadcast %cst_72 : f32 to vector<8x1xf32>
    %170 = arith.divf %168, %169 : vector<8x1xf32>
    %171 = vector.broadcast %163 : vector<8x1xf32> to vector<8x32xf32>
    %172 = arith.subf %159, %171 : vector<8x32xf32>
    %cst_73 = arith.constant 9.99999974E-6 : f32
    %173 = vector.broadcast %cst_73 : f32 to vector<8x1xf32>
    %174 = arith.addf %170, %173 : vector<8x1xf32>
    %175 = math.rsqrt %174 : vector<8x1xf32>
    %176 = vector.broadcast %175 : vector<8x1xf32> to vector<8x32xf32>
    %177 = arith.mulf %172, %176 : vector<8x32xf32>
    %178 = vector.broadcast %4 : vector<1x32xf32> to vector<8x32xf32>
    %179 = arith.mulf %177, %178 : vector<8x32xf32>
    %180 = vector.broadcast %5 : vector<1x32xf32> to vector<8x32xf32>
    %181 = arith.addf %179, %180 : vector<8x32xf32>
    %cst_74 = arith.constant dense<0.000000e+00> : vector<8x96xf32>
    %182 = tpu.matmul %181, %6, %cst_74 {dimension_numbers = #tpu.dot_dimension_numbers<[1], [0], [0], [1], [0, 0, 1, 1], [], []>} : vector<8x32xf32>, vector<32x96xf32>, vector<8x96xf32> -> vector<8x96xf32>
    %183 = arith.addf %182, %9 : vector<8x96xf32>
    %184 = vector.extract_strided_slice %183 {offsets = [0, 0], sizes = [8, 8], strides = [1, 1]} : vector<8x96xf32> to vector<8x8xf32>
    %185 = vector.extract_strided_slice %183 {offsets = [0, 32], sizes = [8, 8], strides = [1, 1]} : vector<8x96xf32> to vector<8x8xf32>
    %186 = vector.extract_strided_slice %183 {offsets = [0, 64], sizes = [8, 8], strides = [1, 1]} : vector<8x96xf32> to vector<8x8xf32>
    %cst_75 = arith.constant dense<0.000000e+00> : vector<8x8xf32>
    %187 = tpu.matmul %184, %185, %cst_75 {dimension_numbers = #tpu.dot_dimension_numbers<[1], [1], [0], [0], [0, 0, 1, 0], [], []>} : vector<8x8xf32>, vector<8x8xf32>, vector<8x8xf32> -> vector<8x8xf32>
    %cst_76 = arith.constant 0.353553385 : f32
    %188 = vector.broadcast %cst_76 : f32 to vector<8x8xf32>
    %189 = arith.mulf %187, %188 : vector<8x8xf32>
    %cst_77 = arith.constant dense<0xFF800000> : vector<8xf32>
    %190 = vector.multi_reduction <maximumf>, %189, %cst_77 [1] : vector<8x8xf32> to vector<8xf32>
    %191 = vector.shape_cast %190 : vector<8xf32> to vector<8x1xf32>
    %192 = vector.broadcast %191 : vector<8x1xf32> to vector<8x8xf32>
    %193 = arith.subf %189, %192 : vector<8x8xf32>
    %194 = math.exp %193 : vector<8x8xf32>
    %cst_78 = arith.constant dense<0.000000e+00> : vector<8xf32>
    %195 = vector.multi_reduction <add>, %194, %cst_78 [1] : vector<8x8xf32> to vector<8xf32>
    %196 = vector.shape_cast %195 : vector<8xf32> to vector<8x1xf32>
    %197 = tpu.reciprocal %196 {approx = true} : vector<8x1xf32> -> vector<8x1xf32>
    %198 = vector.broadcast %197 : vector<8x1xf32> to vector<8x8xf32>
    %199 = arith.mulf %194, %198 : vector<8x8xf32>
    %cst_79 = arith.constant dense<0.000000e+00> : vector<8x8xf32>
    %200 = tpu.matmul %199, %186, %cst_79 {dimension_numbers = #tpu.dot_dimension_numbers<[1], [0], [0], [1], [0, 0, 1, 1], [], []>} : vector<8x8xf32>, vector<8x8xf32>, vector<8x8xf32> -> vector<8x8xf32>
    %cst_80 = arith.constant dense<0.000000e+00> : vector<8x32xf32>
    %201 = tpu.matmul %200, %26, %cst_80 {dimension_numbers = #tpu.dot_dimension_numbers<[1], [0], [0], [1], [0, 0, 1, 1], [], []>} : vector<8x8xf32>, vector<8x32xf32>, vector<8x32xf32> -> vector<8x32xf32>
    %202 = arith.addf %13, %201 : vector<8x32xf32>
    %203 = vector.extract_strided_slice %183 {offsets = [0, 8], sizes = [8, 8], strides = [1, 1]} : vector<8x96xf32> to vector<8x8xf32>
    %204 = vector.extract_strided_slice %183 {offsets = [0, 40], sizes = [8, 8], strides = [1, 1]} : vector<8x96xf32> to vector<8x8xf32>
    %205 = vector.extract_strided_slice %183 {offsets = [0, 72], sizes = [8, 8], strides = [1, 1]} : vector<8x96xf32> to vector<8x8xf32>
    %cst_81 = arith.constant dense<0.000000e+00> : vector<8x8xf32>
    %206 = tpu.matmul %203, %204, %cst_81 {dimension_numbers = #tpu.dot_dimension_numbers<[1], [1], [0], [0], [0, 0, 1, 0], [], []>} : vector<8x8xf32>, vector<8x8xf32>, vector<8x8xf32> -> vector<8x8xf32>
    %cst_82 = arith.constant 0.353553385 : f32
    %207 = vector.broadcast %cst_82 : f32 to vector<8x8xf32>
    %208 = arith.mulf %206, %207 : vector<8x8xf32>
    %cst_83 = arith.constant dense<0xFF800000> : vector<8xf32>
    %209 = vector.multi_reduction <maximumf>, %208, %cst_83 [1] : vector<8x8xf32> to vector<8xf32>
    %210 = vector.shape_cast %209 : vector<8xf32> to vector<8x1xf32>
    %211 = vector.broadcast %210 : vector<8x1xf32> to vector<8x8xf32>
    %212 = arith.subf %208, %211 : vector<8x8xf32>
    %213 = math.exp %212 : vector<8x8xf32>
    %cst_84 = arith.constant dense<0.000000e+00> : vector<8xf32>
    %214 = vector.multi_reduction <add>, %213, %cst_84 [1] : vector<8x8xf32> to vector<8xf32>
    %215 = vector.shape_cast %214 : vector<8xf32> to vector<8x1xf32>
    %216 = tpu.reciprocal %215 {approx = true} : vector<8x1xf32> -> vector<8x1xf32>
    %217 = vector.broadcast %216 : vector<8x1xf32> to vector<8x8xf32>
    %218 = arith.mulf %213, %217 : vector<8x8xf32>
    %cst_85 = arith.constant dense<0.000000e+00> : vector<8x8xf32>
    %219 = tpu.matmul %218, %205, %cst_85 {dimension_numbers = #tpu.dot_dimension_numbers<[1], [0], [0], [1], [0, 0, 1, 1], [], []>} : vector<8x8xf32>, vector<8x8xf32>, vector<8x8xf32> -> vector<8x8xf32>
    %cst_86 = arith.constant dense<0.000000e+00> : vector<8x32xf32>
    %220 = tpu.matmul %219, %27, %cst_86 {dimension_numbers = #tpu.dot_dimension_numbers<[1], [0], [0], [1], [0, 0, 1, 1], [], []>} : vector<8x8xf32>, vector<8x32xf32>, vector<8x32xf32> -> vector<8x32xf32>
    %221 = arith.addf %202, %220 : vector<8x32xf32>
    %222 = vector.extract_strided_slice %183 {offsets = [0, 16], sizes = [8, 8], strides = [1, 1]} : vector<8x96xf32> to vector<8x8xf32>
    %223 = vector.extract_strided_slice %183 {offsets = [0, 48], sizes = [8, 8], strides = [1, 1]} : vector<8x96xf32> to vector<8x8xf32>
    %224 = vector.extract_strided_slice %183 {offsets = [0, 80], sizes = [8, 8], strides = [1, 1]} : vector<8x96xf32> to vector<8x8xf32>
    %cst_87 = arith.constant dense<0.000000e+00> : vector<8x8xf32>
    %225 = tpu.matmul %222, %223, %cst_87 {dimension_numbers = #tpu.dot_dimension_numbers<[1], [1], [0], [0], [0, 0, 1, 0], [], []>} : vector<8x8xf32>, vector<8x8xf32>, vector<8x8xf32> -> vector<8x8xf32>
    %cst_88 = arith.constant 0.353553385 : f32
    %226 = vector.broadcast %cst_88 : f32 to vector<8x8xf32>
    %227 = arith.mulf %225, %226 : vector<8x8xf32>
    %cst_89 = arith.constant dense<0xFF800000> : vector<8xf32>
    %228 = vector.multi_reduction <maximumf>, %227, %cst_89 [1] : vector<8x8xf32> to vector<8xf32>
    %229 = vector.shape_cast %228 : vector<8xf32> to vector<8x1xf32>
    %230 = vector.broadcast %229 : vector<8x1xf32> to vector<8x8xf32>
    %231 = arith.subf %227, %230 : vector<8x8xf32>
    %232 = math.exp %231 : vector<8x8xf32>
    %cst_90 = arith.constant dense<0.000000e+00> : vector<8xf32>
    %233 = vector.multi_reduction <add>, %232, %cst_90 [1] : vector<8x8xf32> to vector<8xf32>
    %234 = vector.shape_cast %233 : vector<8xf32> to vector<8x1xf32>
    %235 = tpu.reciprocal %234 {approx = true} : vector<8x1xf32> -> vector<8x1xf32>
    %236 = vector.broadcast %235 : vector<8x1xf32> to vector<8x8xf32>
    %237 = arith.mulf %232, %236 : vector<8x8xf32>
    %cst_91 = arith.constant dense<0.000000e+00> : vector<8x8xf32>
    %238 = tpu.matmul %237, %224, %cst_91 {dimension_numbers = #tpu.dot_dimension_numbers<[1], [0], [0], [1], [0, 0, 1, 1], [], []>} : vector<8x8xf32>, vector<8x8xf32>, vector<8x8xf32> -> vector<8x8xf32>
    %cst_92 = arith.constant dense<0.000000e+00> : vector<8x32xf32>
    %239 = tpu.matmul %238, %28, %cst_92 {dimension_numbers = #tpu.dot_dimension_numbers<[1], [0], [0], [1], [0, 0, 1, 1], [], []>} : vector<8x8xf32>, vector<8x32xf32>, vector<8x32xf32> -> vector<8x32xf32>
    %240 = arith.addf %221, %239 : vector<8x32xf32>
    %241 = vector.extract_strided_slice %183 {offsets = [0, 24], sizes = [8, 8], strides = [1, 1]} : vector<8x96xf32> to vector<8x8xf32>
    %242 = vector.extract_strided_slice %183 {offsets = [0, 56], sizes = [8, 8], strides = [1, 1]} : vector<8x96xf32> to vector<8x8xf32>
    %243 = vector.extract_strided_slice %183 {offsets = [0, 88], sizes = [8, 8], strides = [1, 1]} : vector<8x96xf32> to vector<8x8xf32>
    %cst_93 = arith.constant dense<0.000000e+00> : vector<8x8xf32>
    %244 = tpu.matmul %241, %242, %cst_93 {dimension_numbers = #tpu.dot_dimension_numbers<[1], [1], [0], [0], [0, 0, 1, 0], [], []>} : vector<8x8xf32>, vector<8x8xf32>, vector<8x8xf32> -> vector<8x8xf32>
    %cst_94 = arith.constant 0.353553385 : f32
    %245 = vector.broadcast %cst_94 : f32 to vector<8x8xf32>
    %246 = arith.mulf %244, %245 : vector<8x8xf32>
    %cst_95 = arith.constant dense<0xFF800000> : vector<8xf32>
    %247 = vector.multi_reduction <maximumf>, %246, %cst_95 [1] : vector<8x8xf32> to vector<8xf32>
    %248 = vector.shape_cast %247 : vector<8xf32> to vector<8x1xf32>
    %249 = vector.broadcast %248 : vector<8x1xf32> to vector<8x8xf32>
    %250 = arith.subf %246, %249 : vector<8x8xf32>
    %251 = math.exp %250 : vector<8x8xf32>
    %cst_96 = arith.constant dense<0.000000e+00> : vector<8xf32>
    %252 = vector.multi_reduction <add>, %251, %cst_96 [1] : vector<8x8xf32> to vector<8xf32>
    %253 = vector.shape_cast %252 : vector<8xf32> to vector<8x1xf32>
    %254 = tpu.reciprocal %253 {approx = true} : vector<8x1xf32> -> vector<8x1xf32>
    %255 = vector.broadcast %254 : vector<8x1xf32> to vector<8x8xf32>
    %256 = arith.mulf %251, %255 : vector<8x8xf32>
    %cst_97 = arith.constant dense<0.000000e+00> : vector<8x8xf32>
    %257 = tpu.matmul %256, %243, %cst_97 {dimension_numbers = #tpu.dot_dimension_numbers<[1], [0], [0], [1], [0, 0, 1, 1], [], []>} : vector<8x8xf32>, vector<8x8xf32>, vector<8x8xf32> -> vector<8x8xf32>
    %cst_98 = arith.constant dense<0.000000e+00> : vector<8x32xf32>
    %258 = tpu.matmul %257, %29, %cst_98 {dimension_numbers = #tpu.dot_dimension_numbers<[1], [0], [0], [1], [0, 0, 1, 1], [], []>} : vector<8x8xf32>, vector<8x32xf32>, vector<8x32xf32> -> vector<8x32xf32>
    %259 = arith.addf %240, %258 : vector<8x32xf32>
    %260 = arith.addf %159, %259 : vector<8x32xf32>
    %cst_99 = arith.constant dense<0.000000e+00> : vector<8xf32>
    %261 = vector.multi_reduction <add>, %260, %cst_99 [1] : vector<8x32xf32> to vector<8xf32>
    %262 = vector.shape_cast %261 : vector<8xf32> to vector<8x1xf32>
    %cst_100 = arith.constant 3.200000e+01 : f32
    %263 = vector.broadcast %cst_100 : f32 to vector<8x1xf32>
    %264 = arith.divf %262, %263 : vector<8x1xf32>
    %265 = vector.broadcast %264 : vector<8x1xf32> to vector<8x32xf32>
    %266 = arith.subf %260, %265 : vector<8x32xf32>
    %267 = arith.mulf %266, %266 : vector<8x32xf32>
    %cst_101 = arith.constant dense<0.000000e+00> : vector<8xf32>
    %268 = vector.multi_reduction <add>, %267, %cst_101 [1] : vector<8x32xf32> to vector<8xf32>
    %269 = vector.shape_cast %268 : vector<8xf32> to vector<8x1xf32>
    %cst_102 = arith.constant 3.200000e+01 : f32
    %270 = vector.broadcast %cst_102 : f32 to vector<8x1xf32>
    %271 = arith.divf %269, %270 : vector<8x1xf32>
    %272 = vector.broadcast %264 : vector<8x1xf32> to vector<8x32xf32>
    %273 = arith.subf %260, %272 : vector<8x32xf32>
    %cst_103 = arith.constant 9.99999974E-6 : f32
    %274 = vector.broadcast %cst_103 : f32 to vector<8x1xf32>
    %275 = arith.addf %271, %274 : vector<8x1xf32>
    %276 = math.rsqrt %275 : vector<8x1xf32>
    %277 = vector.broadcast %276 : vector<8x1xf32> to vector<8x32xf32>
    %278 = arith.mulf %273, %277 : vector<8x32xf32>
    %279 = vector.broadcast %14 : vector<1x32xf32> to vector<8x32xf32>
    %280 = arith.mulf %278, %279 : vector<8x32xf32>
    %281 = vector.broadcast %15 : vector<1x32xf32> to vector<8x32xf32>
    %282 = arith.addf %280, %281 : vector<8x32xf32>
    %cst_104 = arith.constant dense<0.000000e+00> : vector<8x64xf32>
    %283 = tpu.matmul %282, %16, %cst_104 {dimension_numbers = #tpu.dot_dimension_numbers<[1], [0], [0], [1], [0, 0, 1, 1], [], []>} : vector<8x32xf32>, vector<32x64xf32>, vector<8x64xf32> -> vector<8x64xf32>
    %284 = arith.addf %283, %19 : vector<8x64xf32>
    %cst_105 = arith.constant 0.000000e+00 : f32
    %285 = vector.broadcast %cst_105 : f32 to vector<8x64xf32>
    %286 = arith.maximumf %284, %285 : vector<8x64xf32>
    %cst_106 = arith.constant dense<0.000000e+00> : vector<8x32xf32>
    %287 = tpu.matmul %286, %20, %cst_106 {dimension_numbers = #tpu.dot_dimension_numbers<[1], [0], [0], [1], [0, 0, 1, 1], [], []>} : vector<8x64xf32>, vector<64x32xf32>, vector<8x32xf32> -> vector<8x32xf32>
    %288 = arith.addf %260, %287 : vector<8x32xf32>
    %289 = arith.addf %288, %23 : vector<8x32xf32>
    %cst_107 = arith.constant dense<0.000000e+00> : vector<8xf32>
    %290 = vector.multi_reduction <add>, %289, %cst_107 [1] : vector<8x32xf32> to vector<8xf32>
    %291 = vector.shape_cast %290 : vector<8xf32> to vector<8x1xf32>
    %cst_108 = arith.constant 3.200000e+01 : f32
    %292 = vector.broadcast %cst_108 : f32 to vector<8x1xf32>
    %293 = arith.divf %291, %292 : vector<8x1xf32>
    %294 = vector.broadcast %293 : vector<8x1xf32> to vector<8x32xf32>
    %295 = arith.subf %289, %294 : vector<8x32xf32>
    %296 = arith.mulf %295, %295 : vector<8x32xf32>
    %cst_109 = arith.constant dense<0.000000e+00> : vector<8xf32>
    %297 = vector.multi_reduction <add>, %296, %cst_109 [1] : vector<8x32xf32> to vector<8xf32>
    %298 = vector.shape_cast %297 : vector<8xf32> to vector<8x1xf32>
    %cst_110 = arith.constant 3.200000e+01 : f32
    %299 = vector.broadcast %cst_110 : f32 to vector<8x1xf32>
    %300 = arith.divf %298, %299 : vector<8x1xf32>
    %301 = vector.broadcast %293 : vector<8x1xf32> to vector<8x32xf32>
    %302 = arith.subf %289, %301 : vector<8x32xf32>
    %cst_111 = arith.constant 9.99999974E-6 : f32
    %303 = vector.broadcast %cst_111 : f32 to vector<8x1xf32>
    %304 = arith.addf %300, %303 : vector<8x1xf32>
    %305 = math.rsqrt %304 : vector<8x1xf32>
    %306 = vector.broadcast %305 : vector<8x1xf32> to vector<8x32xf32>
    %307 = arith.mulf %302, %306 : vector<8x32xf32>
    %308 = vector.broadcast %24 : vector<1x32xf32> to vector<8x32xf32>
    %309 = arith.mulf %307, %308 : vector<8x32xf32>
    %310 = vector.broadcast %25 : vector<1x32xf32> to vector<8x32xf32>
    %311 = arith.addf %309, %310 : vector<8x32xf32>
    %c0_112 = arith.constant 0 : index
    %c0_113 = arith.constant 0 : index
    %c0_114 = arith.constant 0 : index
    %312 = vector.load %arg17[%c0_112, %c0_113, %c0_114] : memref<1x8x32xf32, #tpu.memory_space<vmem>>, vector<1x8x32xf32>
    %313 = vector.shape_cast %312 : vector<1x8x32xf32> to vector<8x32xf32>
    %314 = vector.shape_cast %311 : vector<8x32xf32> to vector<1x8x32xf32>
    tpu.vector_store %arg17[%c0_112, %c0_113, %c0_114], %314 {strides = array<i32>} : memref<1x8x32xf32, #tpu.memory_space<vmem>>, vector<1x8x32xf32>,
    return
  }
  func.func @transform_0(%arg0: i32) -> (i32, i32, i32) {
    %c0_i32 = arith.constant 0 : i32
    %c0_i32_0 = arith.constant 0 : i32
    %c0_i32_1 = arith.constant 0 : i32
    return %arg0, %c0_i32, %c0_i32_0 : i32, i32, i32
  }
  func.func @transform_1(%arg0: i32) -> (i32, i32) {
    %c0_i32 = arith.constant 0 : i32
    %c0_i32_0 = arith.constant 0 : i32
    %c0_i32_1 = arith.constant 0 : i32
    return %c0_i32, %c0_i32_0 : i32, i32
  }
  func.func @transform_2(%arg0: i32) -> (i32, i32) {
    %c0_i32 = arith.constant 0 : i32
    %c0_i32_0 = arith.constant 0 : i32
    %c0_i32_1 = arith.constant 0 : i32
    return %c0_i32, %c0_i32_0 : i32, i32
  }
  func.func @transform_3(%arg0: i32) -> (i32, i32) {
    %c0_i32 = arith.constant 0 : i32
    %c0_i32_0 = arith.constant 0 : i32
    %c0_i32_1 = arith.constant 0 : i32
    return %c0_i32, %c0_i32_0 : i32, i32
  }
  func.func @transform_4(%arg0: i32) -> (i32, i32) {
    %c0_i32 = arith.constant 0 : i32
    %c0_i32_0 = arith.constant 0 : i32
    %c0_i32_1 = arith.constant 0 : i32
    return %c0_i32, %c0_i32_0 : i32, i32
  }
  func.func @transform_5(%arg0: i32) -> (i32, i32) {
    %c0_i32 = arith.constant 0 : i32
    %c0_i32_0 = arith.constant 0 : i32
    %c0_i32_1 = arith.constant 0 : i32
    return %c0_i32, %c0_i32_0 : i32, i32
  }
  func.func @transform_6(%arg0: i32) -> (i32, i32) {
    %c0_i32 = arith.constant 0 : i32
    %c0_i32_0 = arith.constant 0 : i32
    %c0_i32_1 = arith.constant 0 : i32
    return %c0_i32, %c0_i32_0 : i32, i32
  }
  func.func @transform_7(%arg0: i32) -> (i32, i32) {
    %c0_i32 = arith.constant 0 : i32
    %c0_i32_0 = arith.constant 0 : i32
    %c0_i32_1 = arith.constant 0 : i32
    return %c0_i32, %c0_i32_0 : i32, i32
  }
  func.func @transform_8(%arg0: i32) -> (i32, i32) {
    %c0_i32 = arith.constant 0 : i32
    %c0_i32_0 = arith.constant 0 : i32
    %c0_i32_1 = arith.constant 0 : i32
    return %c0_i32, %c0_i32_0 : i32, i32
  }
  func.func @transform_9(%arg0: i32) -> (i32, i32) {
    %c0_i32 = arith.constant 0 : i32
    %c0_i32_0 = arith.constant 0 : i32
    %c0_i32_1 = arith.constant 0 : i32
    return %c0_i32, %c0_i32_0 : i32, i32
  }
  func.func @transform_10(%arg0: i32) -> (i32, i32) {
    %c0_i32 = arith.constant 0 : i32
    %c0_i32_0 = arith.constant 0 : i32
    %c0_i32_1 = arith.constant 0 : i32
    return %c0_i32, %c0_i32_0 : i32, i32
  }
  func.func @transform_11(%arg0: i32) -> (i32, i32) {
    %c0_i32 = arith.constant 0 : i32
    %c0_i32_0 = arith.constant 0 : i32
    %c0_i32_1 = arith.constant 0 : i32
    return %c0_i32, %c0_i32_0 : i32, i32
  }
  func.func @transform_12(%arg0: i32) -> (i32, i32) {
    %c0_i32 = arith.constant 0 : i32
    %c0_i32_0 = arith.constant 0 : i32
    %c0_i32_1 = arith.constant 0 : i32
    return %c0_i32, %c0_i32_0 : i32, i32
  }
  func.func @transform_13(%arg0: i32) -> (i32, i32) {
    %c0_i32 = arith.constant 0 : i32
    %c0_i32_0 = arith.constant 0 : i32
    %c0_i32_1 = arith.constant 0 : i32
    return %c0_i32, %c0_i32_0 : i32, i32
  }
  func.func @transform_14(%arg0: i32) -> (i32, i32) {
    %c0_i32 = arith.constant 0 : i32
    %c0_i32_0 = arith.constant 0 : i32
    %c0_i32_1 = arith.constant 0 : i32
    return %c0_i32, %c0_i32_0 : i32, i32
  }
  func.func @transform_15(%arg0: i32) -> (i32, i32) {
    %c0_i32 = arith.constant 0 : i32
    %c0_i32_0 = arith.constant 0 : i32
    %c0_i32_1 = arith.constant 0 : i32
    return %c0_i32, %c0_i32_0 : i32, i32
  }
  func.func @transform_16(%arg0: i32) -> (i32, i32, i32) {
    %c0_i32 = arith.constant 0 : i32
    %c0_i32_0 = arith.constant 0 : i32
    %c0_i32_1 = arith.constant 0 : i32
    return %arg0, %c0_i32, %c0_i32_0 : i32, i32, i32
  }
}

</mosaic_0001>

<bundles_post_ra>
// kernel: tpu_custom_call.1
= control target key start
LH: loop header
LB: loop body
LE: loop exit
PB: predicated region body
PF: predicated region fallthrough
CT: control target
= control target key end

     0   :  { %s2660_s0 = inlined_call_operand.hbm [shape: f32[2,8,32], index: 0, kind: input, shape index: {}]   ;;  %s2661_s1 = inlined_call_operand.hbm [shape: f32[8,32], index: 1, kind: input, shape index: {}]   ;;  %s2662_s2 = inlined_call_operand.vmem [shape: f32[1,32], index: 2, kind: input, shape index: {}]   ;;  %s2663_s3 = inlined_call_operand.hbm [shape: f32[1,32], index: 3, kind: input, shape index: {}]   ;;  %s2664_s4 = inlined_call_operand.vmem [shape: f32[32,96], index: 4, kind: input, shape index: {}]   ;;  %s2665_s5 = inlined_call_operand.vmem [shape: f32[1,96], index: 5, kind: input, shape index: {}]   ;;  %s2666_s6 = inlined_call_operand.vmem [shape: f32[32,32], index: 6, kind: input, shape index: {}]   ;;  %s2667_s7 = inlined_call_operand.vmem [shape: f32[1,32], index: 7, kind: input, shape index: {}]   ;;  %s2668_s8 = inlined_call_operand.vmem [shape: f32[1,32], index: 8, kind: input, shape index: {}]   ;;  %s2669_s9 = inlined_call_operand.vmem [shape: f32[1,32], index: 9, kind: input, shape index: {}]   ;;  %s2670_s10 = inlined_call_operand.vmem [shape: f32[32,64], index: 10, kind: input, shape index: {}]   ;;  %s2671_s11 = inlined_call_operand.vmem [shape: f32[1,64], index: 11, kind: input, shape index: {}]   ;;  %s2672_s12 = inlined_call_operand.vmem [shape: f32[64,32], index: 12, kind: input, shape index: {}]   ;;  %s2673_s13 = inlined_call_operand.vmem [shape: f32[1,32], index: 13, kind: input, shape index: {}]   ;;  %s2674_s14 = inlined_call_operand.vmem [shape: f32[1,32], index: 14, kind: input, shape index: {}]   ;;  %s2675_s15 = inlined_call_operand.vmem [shape: f32[1,32], index: 15, kind: input, shape index: {}]   ;;  %s2676_s16 = inlined_call_operand.hbm [shape: f32[2,8,32], index: 16, kind: output, shape index: {}]  }
   0x1   :  { %2690 = sst [smem:[#allocation17_spill]] %s2660_s0 }
   0x2   :  { %2691 = sst [smem:[#allocation18_spill]] %s2661_s1 }
   0x3   :  { %2692 = sst [smem:[#allocation19_spill]] %s2663_s3 }
   0x4   :  { %2693 = sst [smem:[#allocation20_spill]] %s2674_s14 }
   0x5   :  { %2694 = sst [smem:[#allocation21_spill]] %s2675_s15 }
   0x6   :  { %2695 = sst [smem:[#allocation22_spill]] %s2676_s16 }
   0x7   :  { %21 = vsyncpa [#allocation3], 0 }
   0x8   :  { %23 = vsyncpa [#allocation3 + $0x1], 0 }
   0x9   :  { %24 = vsyncpa [#allocation6], 0 }
   0xa   :  { %25 = vsyncpa [#allocation4], 0 }
   0xb   :  { %27 = vsyncpa [#allocation4 + $0x1], 0  ;;  %s2179_s21 = smov 0   ;;  %s2181_s22 = smov 0  }
   0xc   :  { %s2183_s23 = smov 0   ;;  %s2185_s24 = smov 0  }
   0xd LB: > { %2696 = sst [smem:[#allocation12_spill]] %s2066_s21  ;;  %s2200_s25 = sadd.s32 4294967295, %s2078_s24   ;;  %s2078_s24 = sphi %s2185_s24, %s2721_s24   ;;  %s2074_s23 = sphi %s2183_s23, %s2723_s23   ;;  %s2070_s22 = sphi %s2181_s22, %s2725_s22   ;;  %s2066_s21 = sphi %s2179_s21, %s2724_s21  }
   0xe   : > { %2697 = sst [smem:[#allocation13_spill]] %s2074_s23  ;;  %s1731_s26 = sadd.s32 4294967294, %s2078_s24  }
   0xf   : > { %p53_p0 = scmp.ne.s32.totalorder %s2070_s22, %s2066_s21  ;;  %p54_p1 = scmp.eq.s32.totalorder %s2200_s25, 0 }
  0x10   : > { %p392_p2 = scmp.eq.s32.totalorder %s2200_s25, 1  ;;  %p398_p3 = scmp.eq.s32.totalorder %s1731_s26, 1 }
  0x11   : > { %p2209_p4 = por %p54_p1, %p53_p0  ;;  %p1732_p5 = scmp.ge.s32.totalorder %s2078_s24, 1 }
  0x12   : > { %p2214_p6 = por %p398_p3, %p53_p0  ;;  %p405_p7 = scmp.lt.s32.totalorder %s2078_s24, 3 }
  0x13   : > { %s2701_s1 = sld [smem:[#allocation18_spill]]  ;;  %s2080_s18 = smov [#allocation5]  }
  0x14   : > { %s2699_s28 = scalar_select %p2214_p6, 1, 0 }
  0x15   : > { %p2222_p8 = pnand %p1732_p5, %p405_p7  ;;  %s419_s19 = sshll.u32 %s2080_s18, 4  ;;  %s420_s19 = int_to_ptr.vmem [resolvable:$true] %s419_s19 }
  0x16   : > { %2700 = sst [smem:[#allocation14_spill]] %s2699_s28  ;;  %s2081_s30 = smov [#allocation7]  }
  0x17   : > { %p1797_p10 = pneg %p2222_p8  ;;  %s2703_s3 = sld [smem:[#allocation19_spill]] }
  0x18   : > { %s2235_s28 = sadd.s32 1, %s2078_s24   ;;  %s40_s18 = sadd.s32 1, %s2074_s23 }
  0x19   : > { %s417_s0 = sshll.u32 %s2701_s1, 4  ;;  %p1798_p11 = pnand %p1797_p10, %p54_p1  ;;  %s418_s0 = int_to_ptr.hbm [resolvable:$true] %s417_s0 }
  0x1a   : > { %s434_s1 = sshll.u32 %s2081_s30, 4  ;;  %2704 = sst [smem:[#allocation15_spill]] %s2235_s28  ;;  %s435_s1 = int_to_ptr.vmem [resolvable:$true] %s434_s1 }
  0x1b   : > { %1800 = dma.hbm_to_vmem [thread:$0]  (!%p1798_p11), %s418_s0, 128, %s420_s19, [#allocation6]  }
  0x1c   : > { %s37_s21 = ssub.s32 %s2078_s24, %s2235_s28  ;;  %p47_p12 = scmp.ne.s32.totalorder %s2074_s23, %s2070_s22 }
  0x1d   : > { %s432_s29 = sshll.u32 %s2703_s3, 4  ;;  %p38_p13 = scmp.eq.s32.totalorder %s37_s21, 0  ;;  %s433_s29 = int_to_ptr.hbm [resolvable:$true] %s432_s29 }
  0x1e   : > { %1803 = dma.hbm_to_vmem [thread:$0]  (!%p1798_p11), %s433_s29, 16, %s435_s1, [#allocation6]  }
  0x1f   : > { %p48_p0 = scmp.eq.s32.totalorder %s2078_s24, 0  ;;  %p2245_p3 = por %p392_p2, %p47_p12 }
  0x20   : > { %p1814_p5 = scmp.lt.s32.totalorder %s2078_s24, 2  ;;  %s481_s0 = sand.u32 1, %s2074_s23  }
  0x21   : > { %s2251_s26 = scalar_select %p38_p13, %s2074_s23, %s40_s18  }
  0x22   : > { %p49_p7 = por %p48_p0, %p47_p12  ;;  %s1736_s19 = sshll.u32 %s481_s0, 3 }
  0x23   : > { %2706 = sst [smem:[#allocation16_spill]] %s2251_s26  ;;  %s1737_s1 = sshll.u32 %s2078_s24, 3 }
  0x24   : > { %s2707_s3 = sld [smem:[#allocation17_spill]]  ;;  %s485_s28 = scalar_lea.vmem [#allocation2], %s1736_s19 }
  0x25   : > { %s493_s16 = sshll.u32 %s485_s28, 4  ;;  %p2258_p2 = pnand %p1814_p5, %p49_p7  ;;  %s494_s16 = int_to_ptr.vmem [resolvable:$true] %s493_s16 }
  0x26   : > { %s482_s18 = scalar_lea.sflag [#allocation3], %s481_s0 }
  0x27   : > { %p1982_p11 = pneg %p2258_p2 }
  0x2a   : > { %s489_s15 = scalar_lea.hbm %s2707_s3, %s1737_s1 }
  0x2b   : > { %s491_s21 = sshll.u32 %s489_s15, 4  ;;  %s1985_s15 = scalar_lea.hbm %s2707_s3, 16  ;;  %s492_s21 = int_to_ptr.hbm [resolvable:$true] %s491_s21 }
  0x2c   : > { %s1978_s26 = sshra.s32 %s492_s21, 4  ;;  %s1979_s26 = int_to_ptr.hbm [resolvable:$true] %s1978_s26 }
  0x2d   : > { %s1980_s23 = scalar_lea.hbm %s1979_s26, 8  ;;  %p1986_p0 = scmp.lt.s32.totalorder %s1979_s26, %s2707_s3 }
  0x2e   : > { %p1981_p10 = scmp.ne.s32.totalorder %s1979_s26, %s1980_s23  ;;  %p1987_p5 = scmp.lt.s32.totalorder %s1985_s15, %s1980_s23 }
  0x30   : > { %p1983_p12 = pnand %p1982_p11, %p1981_p10  ;;  %p1988_p7 = por %p1987_p5, %p1986_p0 }
  0x32   : > { %p1984_p13 = pneg %p1983_p12 }
  0x34   : > { %p1989_p9 = pnand %p1988_p7, %p1984_p13 }
  0x36   : > { %1992 = shalt.err (!%p1989_p9)
}
  0x37   : > { %1807 = dma.hbm_to_vmem [thread:$0]  (!%p2258_p2), %s492_s21, 128, %s494_s16, %s482_s18  }
  0x38   : > { %502 = sbr.rel (%p2222_p8) target bundleno = 5212 (0x145c), region = 84  ;;  %s2275_s0 = sand.u32 (!%p2222_p8), 1, %s2070_s22  }
  0x39   : > { %s2684_s30 = sshll.u32 (!%p2222_p8), %s2275_s0, 3  ;;  %s505_s1 = scalar_lea.sflag (!%p2222_p8), [#allocation3], %s2275_s0 }
  0x3a   : > { %s508_s23 = scalar_lea.vmem (!%p2222_p8), [#allocation2], %s2684_s30 }
  0x3d   : > { %2053 = dma.done.wait (%p2209_p4), %s505_s1, 128  }
  0x3e   : > { %2055 = vsyncadd (%p2209_p4), %s505_s1, 4294967168 }
  0x3f   : > { %2057 = dma.done.wait (%p54_p1), [#allocation6], 144  }
  0x40   : > { %2059 = vsyncadd (%p54_p1), [#allocation6], 4294967152  ;;  %v568_v0 = vld [vmem:[%s508_s23] sm:$0xff]  ;;  %v569_v1 = vld [vmem:[#allocation5] sm:$0xff]  ;;  %vm613_vm0 = vcmask 261120   ;;  %v2082_v4 = vmov 32.0  }
  0x41   : > { %v2289_v2 = vadd.f32 %v569_v1, %v568_v0  ;;  %1874 = vrcp.f32 %v2082_v4  ;;  %v2301_v16 = vld [vmem:[%s2664_s4 + $0x18] sm:$0xff]  ;;  %v2307_v17 = vld [vmem:[%s2664_s4 + $0x10] sm:$0xff]  ;;  %v2312_v18 = vld [vmem:[%s2664_s4 + $0x8] sm:$0xff]  ;;  %s2083_s23 = smov 88   ;;  %s2689_s14 = smov 64   ;;  %vm677_vm5 = vcmask 64512  }
  0x42   : > { %666 = vmatpush.msra.mxu0 %v2301_v16  ;;  %v2318_v19 = vld [vmem:[%s2664_s4] sm:$0xff]  ;;  %v2328_v32 = vld [vmem:[#allocation7] ss:$0 sm:$0xff]  ;;  %s2085_s16 = smov 96   ;;  %s2086_s27 = smov 56   ;;  %vm1089_vm9 = vcmask 523264  }
  0x43   : > { %v614_v3 = vsel %vm613_vm0, %v2289_v2, 0.0  ;;  %v2326_v29 = vld [vmem:[%s2662_s2] ss:$0 sm:$0xff]  ;;  %s2087_s17 = smov 80   ;;  %s2088_s26 = smov 104  }
  0x44   : > { %615 = vadd.xlane.f32.xlu0 %v614_v3  ;;  %667 = vmatpush.msra.mxu0 %v2307_v17  ;;  %v2336_v35 = vld [vmem:[%s2665_s5] ss:$0 sm:$0xff]  ;;  %s2089_s19 = smov 120   ;;  %s2688_s15 = smov 112   ;;  %v2381_v3 = vld [vmem:[%s2666_s6 + $0x8] sm:$0xff] }
  0x45   : > { %v2361_v44 = vld [vmem:[%s2666_s6] sm:$0xff]  ;;  %s2687_s28 = smov 72   ;;  %848 = vmatpush.msra.mxu1 %v2381_v3  ;;  %s2686_s21 = smov 48  }
  0x46   : > { %668 = vmatpush.msra.mxu0 %v2312_v18  ;;  %758 = vmatpush.msra.mxu3 %v2361_v44  ;;  %s2685_s18 = smov 40   ;;  %s2714_s29 = sld [smem:[#allocation20_spill]] }
  0x47   : > { %v1875_v5 = vpop.eup %1874  ;;  %s1627_s30 = scalar_lea.sflag [#allocation4], %s2275_s0 }
  0x48   : > { %v618_v6 = vmul.f32 32.0, %v1875_v5  ;;  %vm622_vm1 = vweird.f32 %v1875_v5  ;;  %669 = vmatpush.msra.mxu0 %v2318_v19 }
  0x4a   : > { %v619_v7 = vsub.f32 1.0, %v618_v6 }
  0x4c   : > { %v620_v8 = vmul.f32 %v1875_v5, %v619_v7 }
  0x4e   : > { %v621_v9 = vadd.f32 %v1875_v5, %v620_v8 }
  0x50   : > { %v2293_v10 = vsel %vm622_vm1, %v1875_v5, %v621_v9 }
  0xb7   : > { %v616_v11 = vpop.xlane.xlu0 %615 }
  0xb8   : > { %v624_v12 = vmul.f32 %v2293_v10, %v616_v11 }
  0xba   : > { %v625_v13 = vsub.f32 %v2289_v2, %v624_v12 }
  0xbc   : > { %v626_v14 = vmul.f32 %v625_v13, %v625_v13 }
  0xbe   : > { %v627_v15 = vsel %vm613_vm0, %v626_v14, 0.0 }
  0xbf   : > { %628 = vadd.xlane.f32.xlu0 %v627_v15 }
 0x132   : > { %v629_v20 = vpop.xlane.xlu0 %628 }
 0x133   : > { %v630_v21 = vmul.f32 %v629_v20, %v2293_v10 }
 0x135   : > { %v631_v22 = vadd.f32 1e-05, %v630_v21 }
 0x137   : > { %1876 = vrsqrt.f32 %v631_v22  ;;  %vm638_vm3 = vweird.f32 %v631_v22 }
 0x13d   : > { %v1877_v23 = vpop.eup %1876 }
 0x13e   : > { %v633_v24 = vmul.f32 %v1877_v23, %v631_v22  ;;  %vm639_vm2 = vweird.f32 %v1877_v23 }
 0x13f   : > { %vm640_vm4 = vmor %vm638_vm3, %vm639_vm2 }
 0x140   : > { %v634_v25 = vmul.f32 %v1877_v23, %v633_v24 }
 0x142   : > { %v635_v26 = vmul.f32 0.5, %v634_v25 }
 0x144   : > { %v636_v27 = vsub.f32 1.5, %v635_v26 }
 0x146   : > { %v637_v28 = vmul.f32 %v1877_v23, %v636_v27 }
 0x148   : > { %v641_v30 = vsel %vm640_vm4, %v1877_v23, %v637_v28 }
 0x149   : > { %v642_v31 = vmul.f32 %v641_v30, %v625_v13 }
 0x14b   : > { %v646_v33 = vmul.f32 %v2326_v29, %v642_v31 }
 0x14d   : > { %v650_v34 = vadd.f32 %v2328_v32, %v646_v33 }
 0x14f   : > { %1743 = vmatmul.msk.f32.vlgmr.msra.gmra.mxu0 %vm613_vm0, %v650_v34 }
 0x1cc   : > { %v671_v36 = vpop.f32.mrf.mxu0 }
 0x1cd   : > { %v2339_v37 = vadd.f32 %v2336_v35, %v671_v36 }
 0x1cf   : > { %766 = vrot.lane.b32.xlu0 %v2339_v37, %s2083_s23  ;;  %714 = vrot.lane.b32.xlu2 %v2339_v37, %s2689_s14  ;;  %s2715_s14 = sld [smem:[#allocation22_spill]] }
 0x1d0   : > { %675 = vrot.lane.b32.xlu1 %v2339_v37, %s2085_s16 }
 0x229   : > { %v715_v38 = vpop.permute.xlu2 %714 }
 0x22a   : > { %735 = vmatpush.msra.mxu2 %v715_v38 }
 0x241   : > { %v767_v39 = vpop.permute.xlu0 %766 }
 0x242   : > { %v676_v40 = vpop.permute.xlu1 %675  ;;  %1748 = vmatpush.xpose.msk.msrb.mxu2 %vm677_vm5, %v767_v39 }
 0x243   : > { %1744 = vmatpush.xpose.msk.msrb.mxu0 %vm677_vm5, %v676_v40 }
 0x246   : > { %1745 = vmatmul.msk.f32.vlgmr.msrb.gmra.mxu0 %vm677_vm5, %v2339_v37 }
 0x2c3   : > { %v699_v41 = vpop.f32.mrf.mxu0 }
 0x2c4   : > { %v702_v42 = vmul.f32 0.35355338, %v699_v41  ;;  %v2400_v41 = vld [vmem:[%s2666_s6 + $0x10] sm:$0xff] }
 0x2c6   : > { %v703_v43 = vsel %vm677_vm5, %v702_v42, -inf }
 0x2c7   : > { %704 = vmax.xlane.f32.xlu1 %v703_v43 }
 0x2e0   : > { %804 = vrot.lane.b32.xlu1 %v2339_v37, %s2086_s27 }
 0x2e8   : > { %856 = vrot.lane.b32.xlu1 %v2339_v37, %s2087_s17 }
 0x2f0   : > { %944 = vrot.lane.b32.xlu1 %v2339_v37, %s2088_s26 }
 0x33a   : > { %v705_v45 = vpop.xlane.xlu1 %704 }
 0x33b   : > { %v706_v46 = vsub.f32 %v702_v42, %v705_v45 }
 0x33d   : > { %v707_v47 = vmul.f32 1.442695, %v706_v46 }
 0x33f   : > { %1878 = vpow2.f32 %v707_v47 }
 0x345   : > { %v1879_v48 = vpop.eup %1878 }
 0x346   : > { %v709_v49 = vsel %vm677_vm5, %v1879_v48, 0.0 }
 0x347   : > { %710 = vadd.xlane.f32.xlu2 %v709_v49 }
 0x352   : > { %v805_v50 = vpop.permute.xlu1 %804 }
 0x353   : > { %825 = vmatpush.msrb.mxu3 %v805_v50 }
 0x35a   : > { %v857_v51 = vpop.permute.xlu1 %856 }
 0x35b   : > { %1752 = vmatpush.xpose.msk.msra.mxu0 %vm677_vm5, %v857_v51 }
 0x35f   : > { %764 = vrot.lane.b32.xlu2 %v2339_v37, %s2089_s19 }
 0x362   : > { %v945_v12 = vpop.permute.xlu1 %944 }
 0x3ba   : > { %v711_v52 = vpop.xlane.xlu2 %710 }
 0x3bb   : > { %1880 = vrcp.f32 %v711_v52 }
 0x3c1   : > { %v1881_v53 = vpop.eup %1880 }
 0x3c2   : > { %v713_v54 = vmul.f32 %v1881_v53, %v1879_v48  ;;  %v765_v55 = vpop.permute.xlu2 %764 }
 0x3c4   : > { %1746 = vmatmul.msk.f32.vlgmr.msra.gmra.mxu2 %vm677_vm5, %v713_v54 }
 0x3cc   : > { %1749 = vmatmul.msk.f32.vlgmr.msrb.gmra.mxu2 %vm677_vm5, %v765_v55 }
 0x447   : > { %v737_v56 = vpop.f32.mrf.mxu2 }
 0x448   : > { %1747 = vmatmul.msk.f32.vlgmr.msra.gmra.mxu3 %vm677_vm5, %v737_v56 }
 0x449   : > { %938 = vmatpush.msra.mxu3 %v2400_v41 }
 0x44f   : > { %v789_v57 = vpop.f32.mrf.mxu2 }
 0x450   : > { %v792_v58 = vmul.f32 0.35355338, %v789_v57 }
 0x452   : > { %v793_v59 = vsel %vm677_vm5, %v792_v58, -inf }
 0x453   : > { %794 = vmax.xlane.f32.xlu0 %v793_v59  ;;  %v2442_v59 = vld [vmem:[%s2670_s10 + $0x8] sm:$0xff] }
 0x467   : > { %854 = vrot.lane.b32.xlu0 %v2339_v37, %s2688_s15 }
 0x4c6   : > { %v795_v60 = vpop.xlane.xlu0 %794 }
 0x4c7   : > { %v796_v61 = vsub.f32 %v792_v58, %v795_v60  ;;  %v2430_v58 = vld [vmem:[%s2670_s10 + $0x18] sm:$0xff]  ;;  %v2447_v60 = vld [vmem:[%s2670_s10] sm:$0xff] }
 0x4c9   : > { %v797_v62 = vmul.f32 1.442695, %v796_v61  ;;  %v2454_v61 = vld [vmem:[%s2672_s12 + $0x38] sm:$0xff] }
 0x4cb   : > { %1882 = vpow2.f32 %v797_v62  ;;  %v760_v13 = vpop.f32.mrf.mxu3  ;;  %v2459_v62 = vld [vmem:[%s2672_s12 + $0x30] sm:$0xff] }
 0x4d1   : > { %v1883_v63 = vpop.eup %1882 }
 0x4d2   : > { %v799_v0 = vsel %vm677_vm5, %v1883_v63, 0.0 }
 0x4d3   : > { %800 = vadd.xlane.f32.xlu2 %v799_v0 }
 0x4d9   : > { %v855_v1 = vpop.permute.xlu0 %854 }
 0x4da   : > { %1753 = vmatmul.msk.f32.vlgmr.msra.gmra.mxu0 %vm677_vm5, %v855_v1 }
 0x4eb   : > { %946 = vrot.lane.b32.xlu2 %v2339_v37, %s2687_s28  ;;  %s2028_s28 = scalar_lea.hbm %s2715_s14, 16 }
 0x546   : > { %v801_v4 = vpop.xlane.xlu2 %800 }
 0x547   : > { %1884 = vrcp.f32 %v801_v4  ;;  %v2472_v4 = vld [vmem:[%s2672_s12 + $0x20] sm:$0xff] }
 0x54d   : > { %v1885_v5 = vpop.eup %1884 }
 0x54e   : > { %v947_v6 = vpop.permute.xlu2 %946  ;;  %v803_v7 = vmul.f32 %v1885_v5, %v1883_v63  ;;  %v2465_v63 = vld [vmem:[%s2672_s12 + $0x28] sm:$0xff] }
 0x54f   : > { %1756 = vmatpush.xpose.msk.msrb.mxu1 %vm677_vm5, %v947_v6  ;;  %v2478_v6 = vld [vmem:[%s2672_s12 + $0x18] sm:$0xff] }
 0x550   : > { %1750 = vmatmul.msk.f32.vlgmr.msrb.gmra.mxu3 %vm677_vm5, %v803_v7 }
 0x551   : > { %1080 = vmatpush.msrb.mxu3 %v2430_v58 }
 0x557   : > { %v879_v8 = vpop.f32.mrf.mxu0 }
 0x558   : > { %v882_v9 = vmul.f32 0.35355338, %v879_v8 }
 0x55a   : > { %v883_v11 = vsel %vm677_vm5, %v882_v9, -inf }
 0x55b   : > { %884 = vmax.xlane.f32.xlu1 %v883_v11 }
 0x5ce   : > { %v885_v14 = vpop.xlane.xlu1 %884 }
 0x5cf   : > { %v886_v15 = vsub.f32 %v882_v9, %v885_v14  ;;  %v2485_v14 = vld [vmem:[%s2668_s8] ss:$0 sm:$0xff] }
 0x5d1   : > { %v887_v20 = vmul.f32 1.442695, %v886_v15 }
 0x5d3   : > { %1886 = vpow2.f32 %v887_v20  ;;  %v827_v21 = vpop.f32.mrf.mxu3 }
 0x5d4   : > { %1751 = vmatmul.msk.f32.vlgmr.msra.gmra.mxu1 %vm677_vm5, %v827_v21  ;;  %v2490_v21 = vld [vmem:[%s2669_s9] ss:$0 sm:$0xff] }
 0x5d5   : > { %1101 = vmatpush.msra.mxu1 %v2454_v61 }
 0x5d7   : > { %1102 = vmatpush.msra.mxu1 %v2459_v62 }
 0x5d9   : > { %v1887_v22 = vpop.eup %1886  ;;  %1103 = vmatpush.msra.mxu1 %v2465_v63 }
 0x5da   : > { %v889_v23 = vsel %vm677_vm5, %v1887_v22, 0.0 }
 0x5db   : > { %890 = vadd.xlane.f32.xlu2 %v889_v23  ;;  %1104 = vmatpush.msra.mxu1 %v2472_v4 }
 0x5dc   : > { %1757 = vmatmul.msk.f32.vlgmr.msrb.gmra.mxu1 %vm677_vm5, %v945_v12 }
 0x5dd   : > { %1105 = vmatpush.msra.mxu1 %v2478_v6 }
 0x64e   : > { %v891_v33 = vpop.xlane.xlu2 %890 }
 0x651   : > { %v850_v24 = vpop.f32.mrf.mxu1 }
 0x659   : > { %v969_v25 = vpop.f32.mrf.mxu1 }
 0x65a   : > { %v972_v26 = vmul.f32 0.35355338, %v969_v25  ;;  %v2504_v25 = vld [vmem:[%s2672_s12 + $0x8] sm:$0xff] }
 0x65c   : > { %v973_v27 = vsel %vm677_vm5, %v972_v26, -inf }
 0x65d   : > { %974 = vmax.xlane.f32.xlu0 %v973_v27  ;;  %v2517_v27 = vld [vmem:[%s2671_s11] ss:$0 sm:$0xff] }
 0x671   : > { %894 = vrot.lane.b32.xlu0 %v2339_v37, %s2686_s21 }
 0x6d0   : > { %v975_v28 = vpop.xlane.xlu0 %974 }
 0x6d1   : > { %v976_v30 = vsub.f32 %v972_v26, %v975_v28  ;;  %v2510_v26 = vld [vmem:[%s2672_s12] sm:$0xff] }
 0x6d3   : > { %v977_v31 = vmul.f32 1.442695, %v976_v30 }
 0x6d5   : > { %1888 = vpow2.f32 %v977_v31 }
 0x6d6   : > { %1890 = vrcp.f32 %v891_v33  ;;  %v2524_v33 = vld [vmem:[%s2673_s13] ss:$0 sm:$0xff] }
 0x6db   : > { %v1889_v34 = vpop.eup %1888 }
 0x6dc   : > { %v979_v36 = vsel %vm677_vm5, %v1889_v34, 0.0  ;;  %v1891_v38 = vpop.eup %1890 }
 0x6dd   : > { %980 = vadd.xlane.f32.xlu1 %v979_v36  ;;  %v893_v39 = vmul.f32 %v1891_v38, %v1887_v22 }
 0x6e3   : > { %v895_v40 = vpop.permute.xlu0 %894 }
 0x6e4   : > { %915 = vmatpush.msra.mxu2 %v895_v40 }
 0x6e5   : > { %1754 = vmatmul.msk.f32.vlgmr.msra.gmra.mxu2 %vm677_vm5, %v893_v39 }
 0x6f6   : > { %984 = vrot.lane.b32.xlu1 %v2339_v37, %s2685_s18  ;;  %v2413_v37 = vld [vmem:[%s2666_s6 + $0x18] sm:$0xff] }
 0x6f7   : > { %1028 = vmatpush.msrb.mxu2 %v2413_v37 }
 0x750   : > { %v981_v42 = vpop.xlane.xlu1 %980 }
 0x751   : > { %1892 = vrcp.f32 %v981_v42 }
 0x757   : > { %v1893_v43 = vpop.eup %1892 }
 0x758   : > { %v983_v45 = vmul.f32 %v1893_v43, %v1889_v34 }
 0x768   : > { %v917_v46 = vpop.f32.mrf.mxu2  ;;  %v985_v47 = vpop.permute.xlu1 %984 }
 0x769   : > { %1755 = vmatmul.msk.f32.vlgmr.msra.gmra.mxu3 %vm677_vm5, %v917_v46  ;;  %1005 = vmatpush.msrb.mxu0 %v985_v47 }
 0x76a   : > { %1758 = vmatmul.msk.f32.vlgmr.msrb.gmra.mxu0 %vm677_vm5, %v983_v45 }
 0x76b   : > { %1154 = vmatpush.msra.mxu0 %v2301_v16  ;;  %v2420_v16 = vld [vmem:[%s2667_s7] ss:$0 sm:$0xff] }
 0x76d   : > { %1155 = vmatpush.msra.mxu0 %v2307_v17  ;;  %v763_v17 = vadd.f32 %v2420_v16, %v760_v13 }
 0x76f   : > { %1156 = vmatpush.msra.mxu0 %v2312_v18 }
 0x771   : > { %1157 = vmatpush.msra.mxu0 %v2318_v19  ;;  %v853_v19 = vadd.f32 %v850_v24, %v763_v17  ;;  %v2498_v24 = vld [vmem:[%s2672_s12 + $0x10] sm:$0xff] }
 0x772   : > { %1106 = vmatpush.msra.mxu1 %v2498_v24 }
 0x773   : > { %1245 = vmatpush.msrb.mxu0 %v2361_v44 }
 0x774   : > { %1107 = vmatpush.msra.mxu1 %v2504_v25 }
 0x776   : > { %1108 = vmatpush.msra.mxu1 %v2510_v26 }
 0x778   : > { %1335 = vmatpush.msrb.mxu1 %v2381_v3 }
 0x7e7   : > { %v1007_v48 = vpop.f32.mrf.mxu0 }
 0x7e8   : > { %1759 = vmatmul.msk.f32.vlgmr.msrb.gmra.mxu2 %vm677_vm5, %v1007_v48 }
 0x7ec   : > { %v940_v18 = vpop.f32.mrf.mxu3 }
 0x7ed   : > { %v943_v44 = vadd.f32 %v940_v18, %v853_v19 }
 0x86b   : > { %v1030_v49 = vpop.f32.mrf.mxu2 }
 0x86c   : > { %v1033_v50 = vadd.f32 %v1030_v49, %v943_v44 }
 0x86e   : > { %v1034_v51 = vadd.f32 %v1033_v50, %v2289_v2  ;;  %v2436_v2 = vld [vmem:[%s2670_s10 + $0x10] sm:$0xff] }
 0x86f   : > { %1081 = vmatpush.msrb.mxu3 %v2436_v2 }
 0x870   : > { %v1035_v52 = vsel %vm613_vm0, %v1034_v51, 0.0 }
 0x871   : > { %1036 = vadd.xlane.f32.xlu2 %v1035_v52  ;;  %1082 = vmatpush.msrb.mxu3 %v2442_v59 }
 0x873   : > { %1083 = vmatpush.msrb.mxu3 %v2447_v60 }
 0x8e4   : > { %v1037_v53 = vpop.xlane.xlu2 %1036 }
 0x8e5   : > { %v1038_v54 = vmul.f32 %v1037_v53, %v2293_v10 }
 0x8e7   : > { %v1039_v55 = vsub.f32 %v1034_v51, %v1038_v54 }
 0x8e9   : > { %v1040_v56 = vmul.f32 %v1039_v55, %v1039_v55 }
 0x8eb   : > { %v1041_v57 = vsel %vm613_vm0, %v1040_v56, 0.0 }
 0x8ec   : > { %1042 = vadd.xlane.f32.xlu2 %v1041_v57 }
 0x95f   : > { %v1043_v0 = vpop.xlane.xlu2 %1042 }
 0x960   : > { %v1044_v1 = vmul.f32 %v1043_v0, %v2293_v10 }
 0x962   : > { %v1045_v5 = vadd.f32 1e-05, %v1044_v1 }
 0x964   : > { %1894 = vrsqrt.f32 %v1045_v5  ;;  %vm1052_vm7 = vweird.f32 %v1045_v5 }
 0x96a   : > { %v1895_v7 = vpop.eup %1894 }
 0x96b   : > { %v1047_v8 = vmul.f32 %v1895_v7, %v1045_v5  ;;  %vm1053_vm6 = vweird.f32 %v1895_v7 }
 0x96c   : > { %vm1054_vm8 = vmor %vm1052_vm7, %vm1053_vm6 }
 0x96d   : > { %v1048_v9 = vmul.f32 %v1895_v7, %v1047_v8 }
 0x96f   : > { %v1049_v11 = vmul.f32 0.5, %v1048_v9 }
 0x971   : > { %v1050_v12 = vsub.f32 1.5, %v1049_v11 }
 0x973   : > { %v1051_v13 = vmul.f32 %v1895_v7, %v1050_v12 }
 0x975   : > { %v1055_v15 = vsel %vm1054_vm8, %v1895_v7, %v1051_v13 }
 0x976   : > { %v1056_v20 = vmul.f32 %v1055_v15, %v1039_v55 }
 0x978   : > { %v1060_v22 = vmul.f32 %v2485_v14, %v1056_v20 }
 0x97a   : > { %v1064_v23 = vadd.f32 %v2490_v21, %v1060_v22 }
 0x97c   : > { %1760 = vmatmul.msk.f32.vlgmr.msrb.gmra.mxu3 %vm613_vm0, %v1064_v23 }
 0x9ff   : > { %v1085_v28 = vpop.f32.mrf.mxu3 }
 0xa00   : > { %v1086_v30 = vadd.f32 %v2517_v27, %v1085_v28 }
 0xa02   : > { %v1088_v31 = vmax.f32 %v1086_v30, 0.0 }
 0xa04   : > { %1761 = vmatmul.msk.f32.vlgmr.msra.gmra.mxu1 %vm1089_vm9, %v1088_v31 }
 0xa81   : > { %v1110_v34 = vpop.f32.mrf.mxu1 }
 0xa82   : > { %v1113_v36 = vadd.f32 %v1110_v34, %v1034_v51 }
 0xa84   : > { %v2527_v3 = vadd.f32 %v2524_v33, %v1113_v36 }
 0xa86   : > { %v1115_v38 = vsel %vm613_vm0, %v2527_v3, 0.0 }
 0xa87   : > { %1116 = vadd.xlane.f32.xlu0 %v1115_v38 }
 0xafa   : > { %v1117_v39 = vpop.xlane.xlu0 %1116 }
 0xafb   : > { %v1118_v40 = vmul.f32 %v1117_v39, %v2293_v10 }
 0xafd   : > { %v1119_v42 = vsub.f32 %v2527_v3, %v1118_v40 }
 0xaff   : > { %v1120_v43 = vmul.f32 %v1119_v42, %v1119_v42 }
 0xb01   : > { %v1121_v45 = vsel %vm613_vm0, %v1120_v43, 0.0 }
 0xb02   : > { %1122 = vadd.xlane.f32.xlu2 %v1121_v45 }
 0xb75   : > { %v1123_v46 = vpop.xlane.xlu2 %1122 }
 0xb76   : > { %v1124_v47 = vmul.f32 %v1123_v46, %v2293_v10 }
 0xb78   : > { %v1125_v48 = vadd.f32 1e-05, %v1124_v47 }
 0xb7a   : > { %1896 = vrsqrt.f32 %v1125_v48  ;;  %vm1132_vm11 = vweird.f32 %v1125_v48 }
 0xb80   : > { %v1897_v17 = vpop.eup %1896 }
 0xb81   : > { %v1127_v18 = vmul.f32 %v1897_v17, %v1125_v48  ;;  %vm1133_vm10 = vweird.f32 %v1897_v17 }
 0xb82   : > { %vm1134_vm12 = vmor %vm1132_vm11, %vm1133_vm10 }
 0xb83   : > { %v1128_v19 = vmul.f32 %v1897_v17, %v1127_v18 }
 0xb85   : > { %v1129_v44 = vmul.f32 0.5, %v1128_v19 }
 0xb87   : > { %v1130_v49 = vsub.f32 1.5, %v1129_v44 }
 0xb89   : > { %v1131_v50 = vmul.f32 %v1897_v17, %v1130_v49 }
 0xb8b   : > { %v1135_v51 = vsel %vm1134_vm12, %v1897_v17, %v1131_v50 }
 0xb8c   : > { %v1136_v52 = vmul.f32 %v1135_v51, %v1119_v42 }
 0xb8e   : > { %v1137_v53 = vmul.f32 %v2326_v29, %v1136_v52 }
 0xb90   : > { %v1138_v54 = vadd.f32 %v2328_v32, %v1137_v53 }
 0xb92   : > { %1762 = vmatmul.msk.f32.vlgmr.msra.gmra.mxu0 %vm613_vm0, %v1138_v54 }
 0xc0f   : > { %v1159_v55 = vpop.f32.mrf.mxu0 }
 0xc10   : > { %v2539_v56 = vadd.f32 %v2336_v35, %v1159_v55 }
 0xc12   : > { %1253 = vrot.lane.b32.xlu2 %v2539_v56, %s2083_s23  ;;  %1163 = vrot.lane.b32.xlu1 %v2539_v56, %s2085_s16  ;;  %s2709_s23 = smov 64   ;;  %s2710_s16 = smov 112  }
 0xc1a   : > { %1251 = vrot.lane.b32.xlu1 %v2539_v56, %s2089_s19  ;;  %s1782_s19 = sshll.u32 %s2200_s25, 3  ;;  %s2717_s25 = sshll.u32 %s2275_s0, 3 }
 0xc1b   : > { %s1637_s15 = scalar_lea.hbm %s2715_s14, %s1782_s19 }
 0xc6c   : > { %v1254_v0 = vpop.permute.xlu2 %1253 }
 0xc84   : > { %v1164_v57 = vpop.permute.xlu1 %1163 }
 0xc85   : > { %1763 = vmatpush.xpose.msk.msra.mxu2 %vm677_vm5, %v1164_v57 }
 0xc88   : > { %1764 = vmatmul.msk.f32.vlgmr.msra.gmra.mxu2 %vm677_vm5, %v2539_v56 }
 0xc89   : > { %1767 = vmatpush.xpose.msk.msrb.mxu2 %vm677_vm5, %v1254_v0 }
 0xc8c   : > { %v1252_v29 = vpop.permute.xlu1 %1251 }
 0xc90   : > { %1768 = vmatmul.msk.f32.vlgmr.msrb.gmra.mxu2 %vm677_vm5, %v1252_v29 }
 0xd0b   : > { %v1186_v32 = vpop.f32.mrf.mxu2 }
 0xd0c   : > { %v1189_v35 = vmul.f32 0.35355338, %v1186_v32 }
 0xd0e   : > { %v1190_v1 = vsel %vm677_vm5, %v1189_v35, -inf }
 0xd0f   : > { %1191 = vmax.xlane.f32.xlu1 %v1190_v1 }
 0xd13   : > { %v1276_v5 = vpop.f32.mrf.mxu2 }
 0xd14   : > { %v1279_v7 = vmul.f32 0.35355338, %v1276_v5 }
 0xd16   : > { %v1280_v8 = vsel %vm677_vm5, %v1279_v7, -inf }
 0xd17   : > { %1281 = vmax.xlane.f32.xlu2 %v1280_v8 }
 0xd28   : > { %1291 = vrot.lane.b32.xlu1 %v2539_v56, %s2086_s27  ;;  %s2711_s27 = smov 72  }
 0xd2f   : > { %1343 = vrot.lane.b32.xlu2 %v2539_v56, %s2087_s17  ;;  %s2712_s17 = smov 48  }
 0xd30   : > { %1431 = vrot.lane.b32.xlu1 %v2539_v56, %s2088_s26  ;;  %s2713_s26 = smov 40  }
 0xd82   : > { %v1192_v9 = vpop.xlane.xlu1 %1191 }
 0xd83   : > { %v1193_v11 = vsub.f32 %v1189_v35, %v1192_v9 }
 0xd85   : > { %v1194_v12 = vmul.f32 1.442695, %v1193_v11 }
 0xd87   : > { %1898 = vpow2.f32 %v1194_v12 }
 0xd8a   : > { %v1282_v13 = vpop.xlane.xlu2 %1281 }
 0xd8b   : > { %v1283_v15 = vsub.f32 %v1279_v7, %v1282_v13 }
 0xd8d   : > { %v1899_v20 = vpop.eup %1898  ;;  %v1284_v22 = vmul.f32 1.442695, %v1283_v15 }
 0xd8e   : > { %v1196_v23 = vsel %vm677_vm5, %v1899_v20, 0.0 }
 0xd8f   : > { %1900 = vpow2.f32 %v1284_v22  ;;  %1197 = vadd.xlane.f32.xlu0 %v1196_v23 }
 0xd92   : > { %v1344_v28 = vpop.permute.xlu2 %1343 }
 0xd93   : > { %1771 = vmatpush.xpose.msk.msra.mxu0 %vm677_vm5, %v1344_v28 }
 0xd95   : > { %v1901_v30 = vpop.eup %1900 }
 0xd96   : > { %v1286_v31 = vsel %vm677_vm5, %v1901_v30, 0.0 }
 0xd97   : > { %1287 = vadd.xlane.f32.xlu0 %v1286_v31 }
 0xd9a   : > { %v1292_v42 = vpop.permute.xlu1 %1291 }
 0xdab   : > { %1201 = vrot.lane.b32.xlu0 %v2539_v56, %s2709_s23 }
 0xdb3   : > { %1341 = vrot.lane.b32.xlu0 %v2539_v56, %s2710_s16  ;;  %s2716_s16 = sld [smem:[#allocation21_spill]] }
 0xdbb   : > { %1433 = vrot.lane.b32.xlu0 %v2539_v56, %s2711_s27  ;;  %s567_s27 = scalar_lea.vmem [#allocation8], %s2717_s25 }
 0xe02   : > { %v1198_v34 = vpop.xlane.xlu0 %1197 }
 0xe03   : > { %1902 = vrcp.f32 %v1198_v34 }
 0xe09   : > { %v1903_v38 = vpop.eup %1902 }
 0xe0a   : > { %v1288_v36 = vpop.xlane.xlu0 %1287  ;;  %v1200_v39 = vmul.f32 %v1903_v38, %v1899_v20 }
 0xe0b   : > { %1904 = vrcp.f32 %v1288_v36 }
 0xe11   : > { %v1905_v43 = vpop.eup %1904 }
 0xe12   : > { %v1290_v45 = vmul.f32 %v1905_v43, %v1901_v30 }
 0xe1d   : > { %v1202_v40 = vpop.permute.xlu0 %1201 }
 0xe1e   : > { %1222 = vmatpush.msra.mxu3 %v1202_v40 }
 0xe1f   : > { %1765 = vmatmul.msk.f32.vlgmr.msra.gmra.mxu3 %vm677_vm5, %v1200_v39 }
 0xe20   : > { %1312 = vmatpush.msrb.mxu3 %v1292_v42 }
 0xe22   : > { %1425 = vmatpush.msra.mxu3 %v2400_v41 }
 0xe25   : > { %v1342_v46 = vpop.permute.xlu0 %1341 }
 0xe27   : > { %1769 = vmatmul.msk.f32.vlgmr.msrb.gmra.mxu3 %vm677_vm5, %v1290_v45 }
 0xe28   : > { %1561 = vmatpush.msrb.mxu3 %v2430_v58  ;;  %v1432_v58 = vpop.permute.xlu1 %1431 }
 0xe2a   : > { %1562 = vmatpush.msrb.mxu3 %v2436_v2 }
 0xe2c   : > { %1563 = vmatpush.msrb.mxu3 %v2442_v59 }
 0xe2d   : > { %v1434_v47 = vpop.permute.xlu0 %1433 }
 0xe2e   : > { %1775 = vmatpush.xpose.msk.msra.mxu1 %vm677_vm5, %v1434_v47  ;;  %1564 = vmatpush.msrb.mxu3 %v2447_v60 }
 0xea2   : > { %v1224_v48 = vpop.f32.mrf.mxu3 }
 0xea3   : > { %1766 = vmatmul.msk.f32.vlgmr.msrb.gmra.mxu0 %vm677_vm5, %v1224_v48 }
 0xeaa   : > { %v1314_v41 = vpop.f32.mrf.mxu3 }
 0xeab   : > { %1770 = vmatmul.msk.f32.vlgmr.msrb.gmra.mxu1 %vm677_vm5, %v1314_v41  ;;  %1772 = vmatmul.msk.f32.vlgmr.msra.gmra.mxu0 %vm677_vm5, %v1342_v46 }
 0xeac   : > { %1581 = vmatpush.msrb.mxu1 %v2454_v61 }
 0xeae   : > { %1582 = vmatpush.msrb.mxu1 %v2459_v62 }
 0xeb0   : > { %1583 = vmatpush.msrb.mxu1 %v2465_v63 }
 0xeb2   : > { %1584 = vmatpush.msrb.mxu1 %v2472_v4 }
 0xeb3   : > { %1776 = vmatmul.msk.f32.vlgmr.msra.gmra.mxu1 %vm677_vm5, %v1432_v58 }
 0xeb4   : > { %1585 = vmatpush.msrb.mxu1 %v2478_v6 }
 0xeb6   : > { %1586 = vmatpush.msrb.mxu1 %v2498_v24 }
 0xeb8   : > { %1587 = vmatpush.msrb.mxu1 %v2504_v25 }
 0xeba   : > { %1588 = vmatpush.msrb.mxu1 %v2510_v26 }
 0xf20   : > { %v1247_v2 = vpop.f32.mrf.mxu0 }
 0xf21   : > { %v1250_v59 = vadd.f32 %v2420_v16, %v1247_v2 }
 0xf28   : > { %v1337_v60 = vpop.f32.mrf.mxu1  ;;  %v1366_v61 = vpop.f32.mrf.mxu0 }
 0xf29   : > { %v1340_v62 = vadd.f32 %v1337_v60, %v1250_v59  ;;  %v1369_v63 = vmul.f32 0.35355338, %v1366_v61 }
 0xf2b   : > { %v1370_v17 = vsel %vm677_vm5, %v1369_v63, -inf }
 0xf2c   : > { %1371 = vmax.xlane.f32.xlu0 %v1370_v17 }
 0xf30   : > { %v1456_v4 = vpop.f32.mrf.mxu1 }
 0xf31   : > { %v1459_v18 = vmul.f32 0.35355338, %v1456_v4 }
 0xf33   : > { %v1460_v6 = vsel %vm677_vm5, %v1459_v18, -inf }
 0xf34   : > { %1461 = vmax.xlane.f32.xlu1 %v1460_v6 }
 0xf4d   : > { %1381 = vrot.lane.b32.xlu1 %v2539_v56, %s2712_s17  ;;  %s1639_s17 = sshll.u32 %s567_s27, 4  ;;  %s1640_s17 = int_to_ptr.vmem [resolvable:$true] %s1639_s17 }
 0xf9f   : > { %v1372_v24 = vpop.xlane.xlu0 %1371 }
 0xfa0   : > { %v1373_v25 = vsub.f32 %v1369_v63, %v1372_v24 }
 0xfa2   : > { %v1374_v26 = vmul.f32 1.442695, %v1373_v25 }
 0xfa4   : > { %1906 = vpow2.f32 %v1374_v26  ;;  %v1872_v26 = vld [vmem:[%s2714_s29] ss:$0 sm:$0xff] }
 0xfa7   : > { %v1462_v16 = vpop.xlane.xlu1 %1461 }
 0xfa8   : > { %v1463_v19 = vsub.f32 %v1459_v18, %v1462_v16 }
 0xfaa   : > { %v1907_v44 = vpop.eup %1906  ;;  %v1464_v49 = vmul.f32 1.442695, %v1463_v19  ;;  %v1873_v19 = vld [vmem:[%s2716_s16] ss:$0 sm:$0xff] }
 0xfab   : > { %v1376_v50 = vsel %vm677_vm5, %v1907_v44, 0.0 }
 0xfac   : > { %1908 = vpow2.f32 %v1464_v49  ;;  %1377 = vadd.xlane.f32.xlu2 %v1376_v50 }
 0xfb2   : > { %v1909_v51 = vpop.eup %1908 }
 0xfb3   : > { %v1466_v52 = vsel %vm677_vm5, %v1909_v51, 0.0 }
 0xfb4   : > { %1467 = vadd.xlane.f32.xlu0 %v1466_v52 }
 0xfbf   : > { %v1382_v53 = vpop.permute.xlu1 %1381 }
 0xfc0   : > { %1402 = vmatpush.msra.mxu2 %v1382_v53 }
 0xfc2   : > { %1515 = vmatpush.msrb.mxu2 %v2413_v37 }
 0xfc4   : > { %1471 = vrot.lane.b32.xlu2 %v2539_v56, %s2713_s26  ;;  %s1641_s26 = sshll.u32 %s1637_s15, 4  ;;  %s1642_s26 = int_to_ptr.hbm [resolvable:$true] %s1641_s26 }
 0xfc5   : > { %s2022_s18 = sshra.s32 %s1642_s26, 4  ;;  %s2023_s18 = int_to_ptr.hbm [resolvable:$true] %s2022_s18 }
 0xfc6   : > { %s2024_s19 = scalar_lea.hbm %s2023_s18, 8  ;;  %p2029_p9 = scmp.lt.s32.totalorder %s2023_s18, %s2715_s14 }
 0xfc7   : > { %p2025_p1 = scmp.ne.s32.totalorder %s2023_s18, %s2024_s19  ;;  %p2030_p2 = scmp.lt.s32.totalorder %s2028_s28, %s2024_s19 }
 0xfc9   : > { %p2026_p4 = pnand %p2025_p1, %p2245_p3  ;;  %p2031_p10 = por %p2030_p2, %p2029_p9 }
 0xfcb   : > { %p2027_p8 = pneg %p2026_p4 }
 0xfcd   : > { %p2032_p11 = pnand %p2031_p10, %p2027_p8 }
0x101f   : > { %v1378_v54 = vpop.xlane.xlu2 %1377 }
0x1020   : > { %1910 = vrcp.f32 %v1378_v54 }
0x1026   : > { %v1911_v55 = vpop.eup %1910 }
0x1027   : > { %v1380_v57 = vmul.f32 %v1911_v55, %v1907_v44  ;;  %v1472_v0 = vpop.permute.xlu2 %1471  ;;  %v1468_v29 = vpop.xlane.xlu0 %1467 }
0x1028   : > { %1912 = vrcp.f32 %v1468_v29  ;;  %1492 = vmatpush.msrb.mxu0 %v1472_v0 }
0x1029   : > { %1773 = vmatmul.msk.f32.vlgmr.msra.gmra.mxu2 %vm677_vm5, %v1380_v57 }
0x102e   : > { %v1913_v32 = vpop.eup %1912 }
0x102f   : > { %v1470_v35 = vmul.f32 %v1913_v32, %v1909_v51 }
0x1031   : > { %1777 = vmatmul.msk.f32.vlgmr.msrb.gmra.mxu0 %vm677_vm5, %v1470_v35 }
0x10ac   : > { %v1404_v1 = vpop.f32.mrf.mxu2 }
0x10ad   : > { %1774 = vmatmul.msk.f32.vlgmr.msra.gmra.mxu3 %vm677_vm5, %v1404_v1 }
0x10ae   : > { %v1494_v37 = vpop.f32.mrf.mxu0 }
0x10af   : > { %1778 = vmatmul.msk.f32.vlgmr.msrb.gmra.mxu2 %vm677_vm5, %v1494_v37 }
0x1130   : > { %v1427_v56 = vpop.f32.mrf.mxu3 }
0x1131   : > { %v1430_v5 = vadd.f32 %v1427_v56, %v1340_v62 }
0x1132   : > { %v1517_v7 = vpop.f32.mrf.mxu2 }
0x1133   : > { %v1520_v8 = vadd.f32 %v1517_v7, %v1430_v5 }
0x1135   : > { %v1521_v9 = vadd.f32 %v1520_v8, %v2527_v3 }
0x1137   : > { %v1522_v11 = vsel %vm613_vm0, %v1521_v9, 0.0 }
0x1138   : > { %1523 = vadd.xlane.f32.xlu0 %v1522_v11 }
0x11ab   : > { %v1524_v12 = vpop.xlane.xlu0 %1523 }
0x11ac   : > { %v1525_v13 = vmul.f32 %v1524_v12, %v2293_v10 }
0x11ae   : > { %v1526_v15 = vsub.f32 %v1521_v9, %v1525_v13 }
0x11b0   : > { %v1527_v20 = vmul.f32 %v1526_v15, %v1526_v15 }
0x11b2   : > { %v1528_v22 = vsel %vm613_vm0, %v1527_v20, 0.0 }
0x11b3   : > { %1529 = vadd.xlane.f32.xlu0 %v1528_v22 }
0x1226   : > { %v1530_v23 = vpop.xlane.xlu0 %1529 }
0x1227   : > { %v1531_v28 = vmul.f32 %v1530_v23, %v2293_v10 }
0x1229   : > { %v1532_v30 = vadd.f32 1e-05, %v1531_v28 }
0x122b   : > { %1914 = vrsqrt.f32 %v1532_v30  ;;  %vm1539_vm14 = vweird.f32 %v1532_v30 }
0x1231   : > { %v1915_v31 = vpop.eup %1914 }
0x1232   : > { %v1534_v34 = vmul.f32 %v1915_v31, %v1532_v30  ;;  %vm1540_vm13 = vweird.f32 %v1915_v31 }
0x1233   : > { %vm1541_vm15 = vmor %vm1539_vm14, %vm1540_vm13 }
0x1234   : > { %v1535_v36 = vmul.f32 %v1915_v31, %v1534_v34 }
0x1236   : > { %v1536_v3 = vmul.f32 0.5, %v1535_v36 }
0x1238   : > { %v1537_v38 = vsub.f32 1.5, %v1536_v3 }
0x123a   : > { %v1538_v39 = vmul.f32 %v1915_v31, %v1537_v38 }
0x123c   : > { %v1542_v40 = vsel %vm1541_vm15, %v1915_v31, %v1538_v39 }
0x123d   : > { %v1543_v42 = vmul.f32 %v1542_v40, %v1526_v15 }
0x123f   : > { %v1544_v43 = vmul.f32 %v2485_v14, %v1543_v42 }
0x1241   : > { %v1545_v45 = vadd.f32 %v2490_v21, %v1544_v43 }
0x1243   : > { %1779 = vmatmul.msk.f32.vlgmr.msrb.gmra.mxu3 %vm613_vm0, %v1545_v45 }
0x12c6   : > { %v1566_v46 = vpop.f32.mrf.mxu3 }
0x12c7   : > { %v1567_v47 = vadd.f32 %v2517_v27, %v1566_v46 }
0x12c9   : > { %v1569_v48 = vmax.f32 %v1567_v47, 0.0 }
0x12cb   : > { %1780 = vmatmul.msk.f32.vlgmr.msrb.gmra.mxu1 %vm1089_vm9, %v1569_v48 }
0x1348   : > { %v1590_v41 = vpop.f32.mrf.mxu1 }
0x1349   : > { %v1593_v58 = vadd.f32 %v1590_v41, %v1521_v9 }
0x134b   : > { %v1594_v2 = vadd.f32 %v2524_v33, %v1593_v58 }
0x134d   : > { %v1595_v59 = vsel %vm613_vm0, %v1594_v2, 0.0 }
0x134e   : > { %1596 = vadd.xlane.f32.xlu0 %v1595_v59 }
0x13c1   : > { %v1597_v60 = vpop.xlane.xlu0 %1596 }
0x13c2   : > { %v1598_v14 = vmul.f32 %v1597_v60, %v2293_v10 }
0x13c4   : > { %v1599_v21 = vsub.f32 %v1594_v2, %v1598_v14 }
0x13c6   : > { %v1600_v61 = vmul.f32 %v1599_v21, %v1599_v21 }
0x13c8   : > { %v1601_v62 = vsel %vm613_vm0, %v1600_v61, 0.0 }
0x13c9   : > { %1602 = vadd.xlane.f32.xlu1 %v1601_v62 }
0x143c   : > { %v1603_v27 = vpop.xlane.xlu1 %1602 }
0x143d   : > { %v1604_v63 = vmul.f32 %v1603_v27, %v2293_v10 }
0x143f   : > { %v1605_v17 = vadd.f32 1e-05, %v1604_v63 }
0x1441   : > { %1916 = vrsqrt.f32 %v1605_v17  ;;  %vm1612_vm2 = vweird.f32 %v1605_v17 }
0x1447   : > { %v1917_v4 = vpop.eup %1916 }
0x1448   : > { %v1607_v33 = vmul.f32 %v1917_v4, %v1605_v17  ;;  %vm1613_vm1 = vweird.f32 %v1917_v4 }
0x1449   : > { %vm1614_vm3 = vmor %vm1612_vm2, %vm1613_vm1 }
0x144a   : > { %v1608_v18 = vmul.f32 %v1917_v4, %v1607_v33 }
0x144c   : > { %v1609_v6 = vmul.f32 0.5, %v1608_v18 }
0x144e   : > { %v1610_v24 = vsub.f32 1.5, %v1609_v6 }
0x1450   : > { %v1611_v25 = vmul.f32 %v1917_v4, %v1610_v24 }
0x1452   : > { %v1615_v10 = vsel %vm1614_vm3, %v1917_v4, %v1611_v25 }
0x1453   : > { %v1616_v16 = vmul.f32 %v1615_v10, %v1599_v21 }
0x1455   : > { %v1620_v44 = vmul.f32 %v1872_v26, %v1616_v16 }
0x1457   : > { %v1624_v49 = vadd.f32 %v1873_v19, %v1620_v44 }
0x1459   : > { %1625 = vst.msk [vmem:[%s567_s27] sm:$0xff] %vm613_vm0, %v1624_v49 }
0x145a   : > { %2035 = shalt.err (!%p2032_p11)
}
0x145b   : > { %1795 = dma.vmem_to_hbm [thread:$0]  (%p2245_p3), %s1640_s17, 128, %s1642_s26, %s1627_s30  }
0x145c PF: > { %s2718_s0 = sld [smem:[#allocation12_spill]]  ;;  %p2720_p12 = scmp.ge.s32.totalorder %s2078_s24, 2 }
0x145e   : > { %p1809_p13 = pnand %p2720_p12, %p2214_p6 }
0x1460   : > { %p1810_p0 = pneg %p1809_p13 }
0x1462   : > { %s1653_s16 = sand.u32 1, %s2718_s0  }
0x1463   : > { %s1654_s25 = scalar_lea.sflag [#allocation4], %s1653_s16 }
0x1464   : > { %2061 = dma.done.wait (%p1810_p0), %s1654_s25, 128  }
0x1465   : > { %2063 = vsyncadd (%p1810_p0), %s1654_s25, 4294967168  ;;  %s2721_s24 = sld [smem:[#allocation15_spill]]  ;;  %s2724_s21 = smov %s2070_s22 }
0x1466   : > { %s2722_s27 = sld [smem:[#allocation13_spill]] }
0x1467   : > { %s2723_s23 = sld [smem:[#allocation16_spill]] }
0x146b   : > { %p30_p5 = scmp.ge.s32.totalorder %s2721_s24, 4  }
0x146c   : > { %s2725_s22 = smov %s2722_s27 }
0x146d   :  { %32 = sbr.rel (!%p30_p5) target bundleno = 13 (0xd), region = 137 }
0x1472   :  { %1660 = vsyncpa [#allocation3], 1 }
0x1473   :  { %1662 = vsyncpa [#allocation3 + $0x1], 1 }
0x1474   :  { %1663 = vsyncpa [#allocation6], 1 }
0x1475   :  { %1664 = vsyncpa [#allocation4], 1 }
0x1476   :  { %1666 = vsyncpa [#allocation4 + $0x1], 1 }

</bundles_post_ra>
